<compile_context>
chip_gen: v5e
topology: v5e:2x2
jax: 0.10.0
libtpu: 0.0.40
codegen_flags: <defaults>
</compile_context>

<pallas_src>
import jax
import jax.numpy as jnp
import numpy as np
from jax.experimental import pallas as pl
from jax.experimental.pallas import tpu as pltpu

_LANE = 128          # lane width: gates and classifier output padded to this
_SUBLANE = 8         # f32 sublane tile: batch padded to a multiple of this
_NEG_SLOPE = 0.01    # torch.nn.LeakyReLU default negative_slope


def _sigmoid1eup(x):
    """sigmoid(x) == 0.5 * tanh(0.5 * x) + 0.5 : a single EUP op per gate."""
    return 0.5 * jnp.tanh(0.5 * x) + 0.5


def _lstm_classifier_kernel(x_ref, wih_ref, whh_ref, b_ref, wcls_ref, bcls_ref, o_ref):
    # x_ref    (T*Bp, D)     bf16  time-major, batch padded to Bp
    # wih_ref  (D, 4*Hp)     bf16  gate order [i | f | g | o], each 128-lane block
    # whh_ref  (Hp, 4*Hp)    bf16  rows >= H are zero
    # b_ref    (1, 4*Hp)     f32   b_ih + b_hh fused, zero in padded lanes
    # wcls_ref (T*Hp, Cp)    bf16  flattened classifier weight, padded rows zero
    # bcls_ref (1, Cp)       f32
    # o_ref    (Bp, Cp)      f32
    Hp = whh_ref.shape[0]
    Bp = o_ref.shape[0]
    T = x_ref.shape[0] // Bp

    # Input projection hoisted off the recurrent chain: one fused matmul for
    # all timesteps and all 4 gates, with the fused bias added once.
    xp = jnp.dot(x_ref[...], wih_ref[...],
                 preferred_element_type=jnp.float32) + b_ref[...]      # (T*Bp, 4*Hp) f32

    h = jnp.zeros((Bp, Hp), jnp.float32)
    c = jnp.zeros((Bp, Hp), jnp.float32)
    acts = []

    # Static unroll over the (small, fixed) time dimension.  All slices below
    # are static and (8,128)-aligned: Bp-row sublane blocks, Hp-lane gates.
    for t in range(T):
        # Single fused recurrent matmul -> all four gates at once: (Bp, 4*Hp).
        g = xp[t * Bp:(t + 1) * Bp, :] + jnp.dot(
            h.astype(whh_ref.dtype), whh_ref[...],
            preferred_element_type=jnp.float32)
        i_g = _sigmoid1eup(g[:, 0 * Hp:1 * Hp])
        f_g = _sigmoid1eup(g[:, 1 * Hp:2 * Hp])
        g_g = jnp.tanh(g[:, 2 * Hp:3 * Hp])
        o_g = _sigmoid1eup(g[:, 3 * Hp:4 * Hp])
        c = f_g * c + i_g * g_g
        h = o_g * jnp.tanh(c)
        # LeakyReLU on the LSTM output (the only thing the classifier sees).
        acts.append(jnp.where(h > 0, h, jnp.float32(_NEG_SLOPE) * h))

    # Flatten + Linear as ONE matmul: concat along lanes (each act is a full
    # 128-wide block, so this is pure vreg placement) then (Bp,T*Hp)x(T*Hp,Cp).
    flat = jnp.concatenate(acts, axis=1)                               # (Bp, T*Hp) f32
    logits = jnp.dot(flat.astype(wcls_ref.dtype), wcls_ref[...],
                     preferred_element_type=jnp.float32) + bcls_ref[...]
    o_ref[...] = logits.astype(o_ref.dtype)


def prepare_params(w_ih, w_hh, b_ih, b_hh, w_cls, b_cls, time_slices):
    """One-time weight re-layout (keep out of the per-call hot path)."""
    H = w_hh.shape[1]
    D = w_ih.shape[1]
    C = w_cls.shape[0]
    T = time_slices
    mm_dtype = jnp.bfloat16  # MXU-native on v5e/v6e/v7x; accumulation stays f32

    Hp = max(_LANE, int(np.ceil(H / _LANE)) * _LANE)
    Cp = max(_LANE, int(np.ceil(C / _LANE)) * _LANE)

    wih_t = jnp.transpose(w_ih)                                  # (D, 4H), gates [i,f,g,o]
    whh_t = jnp.transpose(w_hh)                                  # (H, 4H)
    b_sum = (b_ih + b_hh)                                        # (4H,)

    # Lane-aligned gate layout: each gate gets its own Hp(=128)-lane block.
    wih_c = jnp.zeros((D, 4 * Hp), jnp.float32)
    whh_c = jnp.zeros((Hp, 4 * Hp), jnp.float32)
    b_c = jnp.zeros((1, 4 * Hp), jnp.float32)
    for gidx in range(4):
        src = slice(gidx * H, (gidx + 1) * H)
        dst = slice(gidx * Hp, gidx * Hp + H)
        wih_c = wih_c.at[:, dst].set(wih_t[:, src])
        whh_c = whh_c.at[:H, dst].set(whh_t[:, src])
        b_c = b_c.at[0, dst].set(b_sum[src])
    wih_c = wih_c.astype(mm_dtype)
    whh_c = whh_c.astype(mm_dtype)

    # Classifier weight: (C, T*H) -> (T, H, C) -> pad to (T, Hp, Cp) -> flatten
    # to (T*Hp, Cp) so the epilogue is a single matmul over K = T*Hp.
    wcls_t = jnp.transpose(w_cls.reshape(C, T, H), (1, 2, 0))    # (T, H, C)
    wcls_p = jnp.zeros((T, Hp, Cp), jnp.float32).at[:, :H, :C].set(wcls_t)
    wcls_f = wcls_p.reshape(T * Hp, Cp).astype(mm_dtype)
    bcls_p = jnp.zeros((1, Cp), jnp.float32).at[0, :C].set(b_cls.astype(jnp.float32))
    return wih_c, whh_c, b_c, wcls_f, bcls_p


def lstm_apply(params, x, num_classes):
    """x: (B, T, D) float32 -> logits (B, num_classes)."""
    wih_c, whh_c, b_c, wcls_f, bcls_p = params
    B, T, D = x.shape
    Hp = whh_c.shape[0]
    Cp = bcls_p.shape[1]

    # Sublane-pad the batch so every per-step slice / the output store is a
    # full (8,128) tile.  Padded rows are zero and simply discarded.
    Bp = max(_SUBLANE, int(np.ceil(B / _SUBLANE)) * _SUBLANE)
    x_pad = jnp.zeros((Bp, T, D), x.dtype).at[:B].set(x)
    x_tm = jnp.transpose(x_pad, (1, 0, 2)).reshape(T * Bp, D).astype(wih_c.dtype)

    # Advisory cost estimate so XLA schedules around the custom call.
    flops = (2 * T * Bp * D * 4 * Hp          # input projection
             + T * 2 * Bp * Hp * 4 * Hp       # recurrent matmuls
             + 2 * Bp * T * Hp * Cp)          # classifier
    transcendentals = T * Bp * Hp * 5         # 4 gate tanh + tanh(c) per step
    bytes_accessed = sum(int(np.prod(a.shape)) * a.dtype.itemsize
                         for a in (x_tm, wih_c, whh_c, b_c, wcls_f, bcls_p))
    bytes_accessed += Bp * Cp * 4

    vmem = pl.BlockSpec(memory_space=pltpu.MemorySpace.VMEM)
    out = pl.pallas_call(
        _lstm_classifier_kernel,
        out_shape=jax.ShapeDtypeStruct((Bp, Cp), jnp.float32),
        in_specs=[vmem] * 6,
        out_specs=vmem,
        cost_estimate=pl.CostEstimate(flops=flops,
                                      transcendentals=transcendentals,
                                      bytes_accessed=bytes_accessed),
    )(x_tm, wih_c, whh_c, b_c, wcls_f, bcls_p)
    return out[:B, :num_classes]


def lstm_forward(x, w_ih, w_hh, b_ih, b_hh, w_cls, b_cls):
    """Convenience wrapper matching the raw-parameter interface."""
    _, T, _ = x.shape
    C = w_cls.shape[0]
    params = prepare_params(w_ih, w_hh, b_ih, b_hh, w_cls, b_cls, T)
    return lstm_apply(params, x, C)


def lstm_reference(x, w_ih, w_hh, b_ih, b_hh, w_cls, b_cls):
    """Pure-JAX f32 reference matching torch.nn.LSTM + LeakyReLU + Linear."""
    B, T, D = x.shape
    H = w_hh.shape[1]

    def cell(carry, x_t):
        h, c = carry
        gates = x_t @ w_ih.T + b_ih + h @ w_hh.T + b_hh
        i_g = jax.nn.sigmoid(gates[:, 0 * H:1 * H])
        f_g = jax.nn.sigmoid(gates[:, 1 * H:2 * H])
        g_g = jnp.tanh(gates[:, 2 * H:3 * H])
        o_g = jax.nn.sigmoid(gates[:, 3 * H:4 * H])
        c_new = f_g * c + i_g * g_g
        h_new = o_g * jnp.tanh(c_new)
        return (h_new, c_new), h_new

    h0 = jnp.zeros((B, H), jnp.float32)
    c0 = jnp.zeros((B, H), jnp.float32)
    _, hs = jax.lax.scan(cell, (h0, c0), jnp.transpose(x, (1, 0, 2)))
    out = jnp.transpose(hs, (1, 0, 2))                 # (B, T, H)
    out = jnp.where(out > 0, out, _NEG_SLOPE * out)    # LeakyReLU
    out = out.reshape(B, T * H)
    return out @ w_cls.T + b_cls


if __name__ == "__main__":
    # Shapes consistent with the module: time_slices=8, dim=16,
    # n_hidden=40 (module default), num_classes=5, batch=2.
    B, T, D, H, C = 2, 8, 16, 40, 5

    key = jax.random.PRNGKey(0)
    ks = jax.random.split(key, 7)
    k_lstm = 1.0 / np.sqrt(H)
    k_cls = 1.0 / np.sqrt(T * H)

    x = jax.random.normal(ks[0], (B, T, D), jnp.float32)
    w_ih = jax.random.uniform(ks[1], (4 * H, D), jnp.float32, -k_lstm, k_lstm)
    w_hh = jax.random.uniform(ks[2], (4 * H, H), jnp.float32, -k_lstm, k_lstm)
    b_ih = jax.random.uniform(ks[3], (4 * H,), jnp.float32, -k_lstm, k_lstm)
    b_hh = jax.random.uniform(ks[4], (4 * H,), jnp.float32, -k_lstm, k_lstm)
    w_cls = jax.random.uniform(ks[5], (C, T * H), jnp.float32, -k_cls, k_cls)
    b_cls = jax.random.uniform(ks[6], (C,), jnp.float32, -k_cls, k_cls)

    # Prepare weights once (re-layout hoisted out of the per-call path).
    params = prepare_params(w_ih, w_hh, b_ih, b_hh, w_cls, b_cls, T)
    out = lstm_apply(params, x, C)
    out = jax.block_until_ready(out)

    ref = lstm_reference(x, w_ih, w_hh, b_ih, b_hh, w_cls, b_cls)
    # bf16 MXU inputs (f32 accumulation/state) -> relaxed tolerance vs f32 ref.
    np.testing.assert_allclose(np.asarray(out), np.asarray(ref), rtol=2e-2, atol=2e-2)

    print("KERNEL_OK")
</pallas_src>

<mosaic_0001>
module attributes {stable_mosaic.version = 11 : i64} {
  func.func @_lstm_classifier_kernel(%arg0: memref<64x16xbf16, #tpu.memory_space<vmem>>, %arg1: memref<16x512xbf16, #tpu.memory_space<vmem>>, %arg2: memref<128x512xbf16, #tpu.memory_space<vmem>>, %arg3: memref<1x512xf32, #tpu.memory_space<vmem>>, %arg4: memref<1024x128xbf16, #tpu.memory_space<vmem>>, %arg5: memref<1x128xf32, #tpu.memory_space<vmem>>, %arg6: memref<8x128xf32, #tpu.memory_space<vmem>>) attributes {dimension_semantics = [], scalar_prefetch = 0 : i64, scratch_operands = 0 : i64, tpu.core_type = #tpu.core_type<tc>} {
    %c0 = arith.constant 0 : index
    %c0_0 = arith.constant 0 : index
    %0 = vector.load %arg0[%c0, %c0_0] : memref<64x16xbf16, #tpu.memory_space<vmem>>, vector<64x16xbf16>
    %c0_1 = arith.constant 0 : index
    %c0_2 = arith.constant 0 : index
    %1 = vector.load %arg1[%c0_1, %c0_2] : memref<16x512xbf16, #tpu.memory_space<vmem>>, vector<16x512xbf16>
    %cst = arith.constant dense<0.000000e+00> : vector<64x512xf32>
    %2 = tpu.matmul %0, %1, %cst {dimension_numbers = #tpu.dot_dimension_numbers<[1], [0], [0], [1], [0, 0, 1, 1], [], []>} : vector<64x16xbf16>, vector<16x512xbf16>, vector<64x512xf32> -> vector<64x512xf32>
    %c0_3 = arith.constant 0 : index
    %c0_4 = arith.constant 0 : index
    %3 = vector.load %arg3[%c0_3, %c0_4] : memref<1x512xf32, #tpu.memory_space<vmem>>, vector<1x512xf32>
    %4 = vector.broadcast %3 : vector<1x512xf32> to vector<64x512xf32>
    %5 = arith.addf %2, %4 : vector<64x512xf32>
    %cst_5 = arith.constant 0.000000e+00 : f32
    %6 = vector.broadcast %cst_5 : f32 to vector<8x128xf32>
    %cst_6 = arith.constant 0.000000e+00 : f32
    %7 = vector.broadcast %cst_6 : f32 to vector<8x128xf32>
    %8 = vector.extract_strided_slice %5 {offsets = [0, 0], sizes = [8, 512], strides = [1, 1]} : vector<64x512xf32> to vector<8x512xf32>
    %9 = arith.truncf %6 : vector<8x128xf32> to vector<8x128xbf16>
    %c0_7 = arith.constant 0 : index
    %c0_8 = arith.constant 0 : index
    %10 = vector.load %arg2[%c0_7, %c0_8] : memref<128x512xbf16, #tpu.memory_space<vmem>>, vector<128x512xbf16>
    %cst_9 = arith.constant dense<0.000000e+00> : vector<8x512xf32>
    %11 = tpu.matmul %9, %10, %cst_9 {dimension_numbers = #tpu.dot_dimension_numbers<[1], [0], [0], [1], [0, 0, 1, 1], [], []>} : vector<8x128xbf16>, vector<128x512xbf16>, vector<8x512xf32> -> vector<8x512xf32>
    %12 = arith.addf %8, %11 : vector<8x512xf32>
    %13 = vector.extract_strided_slice %12 {offsets = [0, 0], sizes = [8, 128], strides = [1, 1]} : vector<8x512xf32> to vector<8x128xf32>
    %cst_10 = arith.constant 5.000000e-01 : f32
    %14 = vector.broadcast %cst_10 : f32 to vector<8x128xf32>
    %15 = arith.mulf %14, %13 : vector<8x128xf32>
    %16 = math.tanh %15 : vector<8x128xf32>
    %cst_11 = arith.constant 5.000000e-01 : f32
    %17 = vector.broadcast %cst_11 : f32 to vector<8x128xf32>
    %18 = arith.mulf %17, %16 : vector<8x128xf32>
    %cst_12 = arith.constant 5.000000e-01 : f32
    %19 = vector.broadcast %cst_12 : f32 to vector<8x128xf32>
    %20 = arith.addf %18, %19 : vector<8x128xf32>
    %21 = vector.extract_strided_slice %12 {offsets = [0, 128], sizes = [8, 128], strides = [1, 1]} : vector<8x512xf32> to vector<8x128xf32>
    %cst_13 = arith.constant 5.000000e-01 : f32
    %22 = vector.broadcast %cst_13 : f32 to vector<8x128xf32>
    %23 = arith.mulf %22, %21 : vector<8x128xf32>
    %24 = math.tanh %23 : vector<8x128xf32>
    %cst_14 = arith.constant 5.000000e-01 : f32
    %25 = vector.broadcast %cst_14 : f32 to vector<8x128xf32>
    %26 = arith.mulf %25, %24 : vector<8x128xf32>
    %cst_15 = arith.constant 5.000000e-01 : f32
    %27 = vector.broadcast %cst_15 : f32 to vector<8x128xf32>
    %28 = arith.addf %26, %27 : vector<8x128xf32>
    %29 = vector.extract_strided_slice %12 {offsets = [0, 256], sizes = [8, 128], strides = [1, 1]} : vector<8x512xf32> to vector<8x128xf32>
    %30 = math.tanh %29 : vector<8x128xf32>
    %31 = vector.extract_strided_slice %12 {offsets = [0, 384], sizes = [8, 128], strides = [1, 1]} : vector<8x512xf32> to vector<8x128xf32>
    %cst_16 = arith.constant 5.000000e-01 : f32
    %32 = vector.broadcast %cst_16 : f32 to vector<8x128xf32>
    %33 = arith.mulf %32, %31 : vector<8x128xf32>
    %34 = math.tanh %33 : vector<8x128xf32>
    %cst_17 = arith.constant 5.000000e-01 : f32
    %35 = vector.broadcast %cst_17 : f32 to vector<8x128xf32>
    %36 = arith.mulf %35, %34 : vector<8x128xf32>
    %cst_18 = arith.constant 5.000000e-01 : f32
    %37 = vector.broadcast %cst_18 : f32 to vector<8x128xf32>
    %38 = arith.addf %36, %37 : vector<8x128xf32>
    %39 = arith.mulf %28, %7 : vector<8x128xf32>
    %40 = arith.mulf %20, %30 : vector<8x128xf32>
    %41 = arith.addf %39, %40 : vector<8x128xf32>
    %42 = math.tanh %41 : vector<8x128xf32>
    %43 = arith.mulf %38, %42 : vector<8x128xf32>
    %cst_19 = arith.constant 0.000000e+00 : f32
    %44 = vector.broadcast %cst_19 : f32 to vector<8x128xf32>
    %45 = arith.cmpf ogt, %43, %44 : vector<8x128xf32>
    %cst_20 = arith.constant 0.00999999977 : f32
    %46 = vector.broadcast %cst_20 : f32 to vector<8x128xf32>
    %47 = arith.mulf %46, %43 : vector<8x128xf32>
    %48 = arith.select %45, %43, %47 : vector<8x128xi1>, vector<8x128xf32>
    %49 = vector.extract_strided_slice %5 {offsets = [8, 0], sizes = [8, 512], strides = [1, 1]} : vector<64x512xf32> to vector<8x512xf32>
    %50 = arith.truncf %43 : vector<8x128xf32> to vector<8x128xbf16>
    %c0_21 = arith.constant 0 : index
    %c0_22 = arith.constant 0 : index
    %51 = vector.load %arg2[%c0_21, %c0_22] : memref<128x512xbf16, #tpu.memory_space<vmem>>, vector<128x512xbf16>
    %cst_23 = arith.constant dense<0.000000e+00> : vector<8x512xf32>
    %52 = tpu.matmul %50, %51, %cst_23 {dimension_numbers = #tpu.dot_dimension_numbers<[1], [0], [0], [1], [0, 0, 1, 1], [], []>} : vector<8x128xbf16>, vector<128x512xbf16>, vector<8x512xf32> -> vector<8x512xf32>
    %53 = arith.addf %49, %52 : vector<8x512xf32>
    %54 = vector.extract_strided_slice %53 {offsets = [0, 0], sizes = [8, 128], strides = [1, 1]} : vector<8x512xf32> to vector<8x128xf32>
    %cst_24 = arith.constant 5.000000e-01 : f32
    %55 = vector.broadcast %cst_24 : f32 to vector<8x128xf32>
    %56 = arith.mulf %55, %54 : vector<8x128xf32>
    %57 = math.tanh %56 : vector<8x128xf32>
    %cst_25 = arith.constant 5.000000e-01 : f32
    %58 = vector.broadcast %cst_25 : f32 to vector<8x128xf32>
    %59 = arith.mulf %58, %57 : vector<8x128xf32>
    %cst_26 = arith.constant 5.000000e-01 : f32
    %60 = vector.broadcast %cst_26 : f32 to vector<8x128xf32>
    %61 = arith.addf %59, %60 : vector<8x128xf32>
    %62 = vector.extract_strided_slice %53 {offsets = [0, 128], sizes = [8, 128], strides = [1, 1]} : vector<8x512xf32> to vector<8x128xf32>
    %cst_27 = arith.constant 5.000000e-01 : f32
    %63 = vector.broadcast %cst_27 : f32 to vector<8x128xf32>
    %64 = arith.mulf %63, %62 : vector<8x128xf32>
    %65 = math.tanh %64 : vector<8x128xf32>
    %cst_28 = arith.constant 5.000000e-01 : f32
    %66 = vector.broadcast %cst_28 : f32 to vector<8x128xf32>
    %67 = arith.mulf %66, %65 : vector<8x128xf32>
    %cst_29 = arith.constant 5.000000e-01 : f32
    %68 = vector.broadcast %cst_29 : f32 to vector<8x128xf32>
    %69 = arith.addf %67, %68 : vector<8x128xf32>
    %70 = vector.extract_strided_slice %53 {offsets = [0, 256], sizes = [8, 128], strides = [1, 1]} : vector<8x512xf32> to vector<8x128xf32>
    %71 = math.tanh %70 : vector<8x128xf32>
    %72 = vector.extract_strided_slice %53 {offsets = [0, 384], sizes = [8, 128], strides = [1, 1]} : vector<8x512xf32> to vector<8x128xf32>
    %cst_30 = arith.constant 5.000000e-01 : f32
    %73 = vector.broadcast %cst_30 : f32 to vector<8x128xf32>
    %74 = arith.mulf %73, %72 : vector<8x128xf32>
    %75 = math.tanh %74 : vector<8x128xf32>
    %cst_31 = arith.constant 5.000000e-01 : f32
    %76 = vector.broadcast %cst_31 : f32 to vector<8x128xf32>
    %77 = arith.mulf %76, %75 : vector<8x128xf32>
    %cst_32 = arith.constant 5.000000e-01 : f32
    %78 = vector.broadcast %cst_32 : f32 to vector<8x128xf32>
    %79 = arith.addf %77, %78 : vector<8x128xf32>
    %80 = arith.mulf %69, %41 : vector<8x128xf32>
    %81 = arith.mulf %61, %71 : vector<8x128xf32>
    %82 = arith.addf %80, %81 : vector<8x128xf32>
    %83 = math.tanh %82 : vector<8x128xf32>
    %84 = arith.mulf %79, %83 : vector<8x128xf32>
    %cst_33 = arith.constant 0.000000e+00 : f32
    %85 = vector.broadcast %cst_33 : f32 to vector<8x128xf32>
    %86 = arith.cmpf ogt, %84, %85 : vector<8x128xf32>
    %cst_34 = arith.constant 0.00999999977 : f32
    %87 = vector.broadcast %cst_34 : f32 to vector<8x128xf32>
    %88 = arith.mulf %87, %84 : vector<8x128xf32>
    %89 = arith.select %86, %84, %88 : vector<8x128xi1>, vector<8x128xf32>
    %90 = vector.extract_strided_slice %5 {offsets = [16, 0], sizes = [8, 512], strides = [1, 1]} : vector<64x512xf32> to vector<8x512xf32>
    %91 = arith.truncf %84 : vector<8x128xf32> to vector<8x128xbf16>
    %c0_35 = arith.constant 0 : index
    %c0_36 = arith.constant 0 : index
    %92 = vector.load %arg2[%c0_35, %c0_36] : memref<128x512xbf16, #tpu.memory_space<vmem>>, vector<128x512xbf16>
    %cst_37 = arith.constant dense<0.000000e+00> : vector<8x512xf32>
    %93 = tpu.matmul %91, %92, %cst_37 {dimension_numbers = #tpu.dot_dimension_numbers<[1], [0], [0], [1], [0, 0, 1, 1], [], []>} : vector<8x128xbf16>, vector<128x512xbf16>, vector<8x512xf32> -> vector<8x512xf32>
    %94 = arith.addf %90, %93 : vector<8x512xf32>
    %95 = vector.extract_strided_slice %94 {offsets = [0, 0], sizes = [8, 128], strides = [1, 1]} : vector<8x512xf32> to vector<8x128xf32>
    %cst_38 = arith.constant 5.000000e-01 : f32
    %96 = vector.broadcast %cst_38 : f32 to vector<8x128xf32>
    %97 = arith.mulf %96, %95 : vector<8x128xf32>
    %98 = math.tanh %97 : vector<8x128xf32>
    %cst_39 = arith.constant 5.000000e-01 : f32
    %99 = vector.broadcast %cst_39 : f32 to vector<8x128xf32>
    %100 = arith.mulf %99, %98 : vector<8x128xf32>
    %cst_40 = arith.constant 5.000000e-01 : f32
    %101 = vector.broadcast %cst_40 : f32 to vector<8x128xf32>
    %102 = arith.addf %100, %101 : vector<8x128xf32>
    %103 = vector.extract_strided_slice %94 {offsets = [0, 128], sizes = [8, 128], strides = [1, 1]} : vector<8x512xf32> to vector<8x128xf32>
    %cst_41 = arith.constant 5.000000e-01 : f32
    %104 = vector.broadcast %cst_41 : f32 to vector<8x128xf32>
    %105 = arith.mulf %104, %103 : vector<8x128xf32>
    %106 = math.tanh %105 : vector<8x128xf32>
    %cst_42 = arith.constant 5.000000e-01 : f32
    %107 = vector.broadcast %cst_42 : f32 to vector<8x128xf32>
    %108 = arith.mulf %107, %106 : vector<8x128xf32>
    %cst_43 = arith.constant 5.000000e-01 : f32
    %109 = vector.broadcast %cst_43 : f32 to vector<8x128xf32>
    %110 = arith.addf %108, %109 : vector<8x128xf32>
    %111 = vector.extract_strided_slice %94 {offsets = [0, 256], sizes = [8, 128], strides = [1, 1]} : vector<8x512xf32> to vector<8x128xf32>
    %112 = math.tanh %111 : vector<8x128xf32>
    %113 = vector.extract_strided_slice %94 {offsets = [0, 384], sizes = [8, 128], strides = [1, 1]} : vector<8x512xf32> to vector<8x128xf32>
    %cst_44 = arith.constant 5.000000e-01 : f32
    %114 = vector.broadcast %cst_44 : f32 to vector<8x128xf32>
    %115 = arith.mulf %114, %113 : vector<8x128xf32>
    %116 = math.tanh %115 : vector<8x128xf32>
    %cst_45 = arith.constant 5.000000e-01 : f32
    %117 = vector.broadcast %cst_45 : f32 to vector<8x128xf32>
    %118 = arith.mulf %117, %116 : vector<8x128xf32>
    %cst_46 = arith.constant 5.000000e-01 : f32
    %119 = vector.broadcast %cst_46 : f32 to vector<8x128xf32>
    %120 = arith.addf %118, %119 : vector<8x128xf32>
    %121 = arith.mulf %110, %82 : vector<8x128xf32>
    %122 = arith.mulf %102, %112 : vector<8x128xf32>
    %123 = arith.addf %121, %122 : vector<8x128xf32>
    %124 = math.tanh %123 : vector<8x128xf32>
    %125 = arith.mulf %120, %124 : vector<8x128xf32>
    %cst_47 = arith.constant 0.000000e+00 : f32
    %126 = vector.broadcast %cst_47 : f32 to vector<8x128xf32>
    %127 = arith.cmpf ogt, %125, %126 : vector<8x128xf32>
    %cst_48 = arith.constant 0.00999999977 : f32
    %128 = vector.broadcast %cst_48 : f32 to vector<8x128xf32>
    %129 = arith.mulf %128, %125 : vector<8x128xf32>
    %130 = arith.select %127, %125, %129 : vector<8x128xi1>, vector<8x128xf32>
    %131 = vector.extract_strided_slice %5 {offsets = [24, 0], sizes = [8, 512], strides = [1, 1]} : vector<64x512xf32> to vector<8x512xf32>
    %132 = arith.truncf %125 : vector<8x128xf32> to vector<8x128xbf16>
    %c0_49 = arith.constant 0 : index
    %c0_50 = arith.constant 0 : index
    %133 = vector.load %arg2[%c0_49, %c0_50] : memref<128x512xbf16, #tpu.memory_space<vmem>>, vector<128x512xbf16>
    %cst_51 = arith.constant dense<0.000000e+00> : vector<8x512xf32>
    %134 = tpu.matmul %132, %133, %cst_51 {dimension_numbers = #tpu.dot_dimension_numbers<[1], [0], [0], [1], [0, 0, 1, 1], [], []>} : vector<8x128xbf16>, vector<128x512xbf16>, vector<8x512xf32> -> vector<8x512xf32>
    %135 = arith.addf %131, %134 : vector<8x512xf32>
    %136 = vector.extract_strided_slice %135 {offsets = [0, 0], sizes = [8, 128], strides = [1, 1]} : vector<8x512xf32> to vector<8x128xf32>
    %cst_52 = arith.constant 5.000000e-01 : f32
    %137 = vector.broadcast %cst_52 : f32 to vector<8x128xf32>
    %138 = arith.mulf %137, %136 : vector<8x128xf32>
    %139 = math.tanh %138 : vector<8x128xf32>
    %cst_53 = arith.constant 5.000000e-01 : f32
    %140 = vector.broadcast %cst_53 : f32 to vector<8x128xf32>
    %141 = arith.mulf %140, %139 : vector<8x128xf32>
    %cst_54 = arith.constant 5.000000e-01 : f32
    %142 = vector.broadcast %cst_54 : f32 to vector<8x128xf32>
    %143 = arith.addf %141, %142 : vector<8x128xf32>
    %144 = vector.extract_strided_slice %135 {offsets = [0, 128], sizes = [8, 128], strides = [1, 1]} : vector<8x512xf32> to vector<8x128xf32>
    %cst_55 = arith.constant 5.000000e-01 : f32
    %145 = vector.broadcast %cst_55 : f32 to vector<8x128xf32>
    %146 = arith.mulf %145, %144 : vector<8x128xf32>
    %147 = math.tanh %146 : vector<8x128xf32>
    %cst_56 = arith.constant 5.000000e-01 : f32
    %148 = vector.broadcast %cst_56 : f32 to vector<8x128xf32>
    %149 = arith.mulf %148, %147 : vector<8x128xf32>
    %cst_57 = arith.constant 5.000000e-01 : f32
    %150 = vector.broadcast %cst_57 : f32 to vector<8x128xf32>
    %151 = arith.addf %149, %150 : vector<8x128xf32>
    %152 = vector.extract_strided_slice %135 {offsets = [0, 256], sizes = [8, 128], strides = [1, 1]} : vector<8x512xf32> to vector<8x128xf32>
    %153 = math.tanh %152 : vector<8x128xf32>
    %154 = vector.extract_strided_slice %135 {offsets = [0, 384], sizes = [8, 128], strides = [1, 1]} : vector<8x512xf32> to vector<8x128xf32>
    %cst_58 = arith.constant 5.000000e-01 : f32
    %155 = vector.broadcast %cst_58 : f32 to vector<8x128xf32>
    %156 = arith.mulf %155, %154 : vector<8x128xf32>
    %157 = math.tanh %156 : vector<8x128xf32>
    %cst_59 = arith.constant 5.000000e-01 : f32
    %158 = vector.broadcast %cst_59 : f32 to vector<8x128xf32>
    %159 = arith.mulf %158, %157 : vector<8x128xf32>
    %cst_60 = arith.constant 5.000000e-01 : f32
    %160 = vector.broadcast %cst_60 : f32 to vector<8x128xf32>
    %161 = arith.addf %159, %160 : vector<8x128xf32>
    %162 = arith.mulf %151, %123 : vector<8x128xf32>
    %163 = arith.mulf %143, %153 : vector<8x128xf32>
    %164 = arith.addf %162, %163 : vector<8x128xf32>
    %165 = math.tanh %164 : vector<8x128xf32>
    %166 = arith.mulf %161, %165 : vector<8x128xf32>
    %cst_61 = arith.constant 0.000000e+00 : f32
    %167 = vector.broadcast %cst_61 : f32 to vector<8x128xf32>
    %168 = arith.cmpf ogt, %166, %167 : vector<8x128xf32>
    %cst_62 = arith.constant 0.00999999977 : f32
    %169 = vector.broadcast %cst_62 : f32 to vector<8x128xf32>
    %170 = arith.mulf %169, %166 : vector<8x128xf32>
    %171 = arith.select %168, %166, %170 : vector<8x128xi1>, vector<8x128xf32>
    %172 = vector.extract_strided_slice %5 {offsets = [32, 0], sizes = [8, 512], strides = [1, 1]} : vector<64x512xf32> to vector<8x512xf32>
    %173 = arith.truncf %166 : vector<8x128xf32> to vector<8x128xbf16>
    %c0_63 = arith.constant 0 : index
    %c0_64 = arith.constant 0 : index
    %174 = vector.load %arg2[%c0_63, %c0_64] : memref<128x512xbf16, #tpu.memory_space<vmem>>, vector<128x512xbf16>
    %cst_65 = arith.constant dense<0.000000e+00> : vector<8x512xf32>
    %175 = tpu.matmul %173, %174, %cst_65 {dimension_numbers = #tpu.dot_dimension_numbers<[1], [0], [0], [1], [0, 0, 1, 1], [], []>} : vector<8x128xbf16>, vector<128x512xbf16>, vector<8x512xf32> -> vector<8x512xf32>
    %176 = arith.addf %172, %175 : vector<8x512xf32>
    %177 = vector.extract_strided_slice %176 {offsets = [0, 0], sizes = [8, 128], strides = [1, 1]} : vector<8x512xf32> to vector<8x128xf32>
    %cst_66 = arith.constant 5.000000e-01 : f32
    %178 = vector.broadcast %cst_66 : f32 to vector<8x128xf32>
    %179 = arith.mulf %178, %177 : vector<8x128xf32>
    %180 = math.tanh %179 : vector<8x128xf32>
    %cst_67 = arith.constant 5.000000e-01 : f32
    %181 = vector.broadcast %cst_67 : f32 to vector<8x128xf32>
    %182 = arith.mulf %181, %180 : vector<8x128xf32>
    %cst_68 = arith.constant 5.000000e-01 : f32
    %183 = vector.broadcast %cst_68 : f32 to vector<8x128xf32>
    %184 = arith.addf %182, %183 : vector<8x128xf32>
    %185 = vector.extract_strided_slice %176 {offsets = [0, 128], sizes = [8, 128], strides = [1, 1]} : vector<8x512xf32> to vector<8x128xf32>
    %cst_69 = arith.constant 5.000000e-01 : f32
    %186 = vector.broadcast %cst_69 : f32 to vector<8x128xf32>
    %187 = arith.mulf %186, %185 : vector<8x128xf32>
    %188 = math.tanh %187 : vector<8x128xf32>
    %cst_70 = arith.constant 5.000000e-01 : f32
    %189 = vector.broadcast %cst_70 : f32 to vector<8x128xf32>
    %190 = arith.mulf %189, %188 : vector<8x128xf32>
    %cst_71 = arith.constant 5.000000e-01 : f32
    %191 = vector.broadcast %cst_71 : f32 to vector<8x128xf32>
    %192 = arith.addf %190, %191 : vector<8x128xf32>
    %193 = vector.extract_strided_slice %176 {offsets = [0, 256], sizes = [8, 128], strides = [1, 1]} : vector<8x512xf32> to vector<8x128xf32>
    %194 = math.tanh %193 : vector<8x128xf32>
    %195 = vector.extract_strided_slice %176 {offsets = [0, 384], sizes = [8, 128], strides = [1, 1]} : vector<8x512xf32> to vector<8x128xf32>
    %cst_72 = arith.constant 5.000000e-01 : f32
    %196 = vector.broadcast %cst_72 : f32 to vector<8x128xf32>
    %197 = arith.mulf %196, %195 : vector<8x128xf32>
    %198 = math.tanh %197 : vector<8x128xf32>
    %cst_73 = arith.constant 5.000000e-01 : f32
    %199 = vector.broadcast %cst_73 : f32 to vector<8x128xf32>
    %200 = arith.mulf %199, %198 : vector<8x128xf32>
    %cst_74 = arith.constant 5.000000e-01 : f32
    %201 = vector.broadcast %cst_74 : f32 to vector<8x128xf32>
    %202 = arith.addf %200, %201 : vector<8x128xf32>
    %203 = arith.mulf %192, %164 : vector<8x128xf32>
    %204 = arith.mulf %184, %194 : vector<8x128xf32>
    %205 = arith.addf %203, %204 : vector<8x128xf32>
    %206 = math.tanh %205 : vector<8x128xf32>
    %207 = arith.mulf %202, %206 : vector<8x128xf32>
    %cst_75 = arith.constant 0.000000e+00 : f32
    %208 = vector.broadcast %cst_75 : f32 to vector<8x128xf32>
    %209 = arith.cmpf ogt, %207, %208 : vector<8x128xf32>
    %cst_76 = arith.constant 0.00999999977 : f32
    %210 = vector.broadcast %cst_76 : f32 to vector<8x128xf32>
    %211 = arith.mulf %210, %207 : vector<8x128xf32>
    %212 = arith.select %209, %207, %211 : vector<8x128xi1>, vector<8x128xf32>
    %213 = vector.extract_strided_slice %5 {offsets = [40, 0], sizes = [8, 512], strides = [1, 1]} : vector<64x512xf32> to vector<8x512xf32>
    %214 = arith.truncf %207 : vector<8x128xf32> to vector<8x128xbf16>
    %c0_77 = arith.constant 0 : index
    %c0_78 = arith.constant 0 : index
    %215 = vector.load %arg2[%c0_77, %c0_78] : memref<128x512xbf16, #tpu.memory_space<vmem>>, vector<128x512xbf16>
    %cst_79 = arith.constant dense<0.000000e+00> : vector<8x512xf32>
    %216 = tpu.matmul %214, %215, %cst_79 {dimension_numbers = #tpu.dot_dimension_numbers<[1], [0], [0], [1], [0, 0, 1, 1], [], []>} : vector<8x128xbf16>, vector<128x512xbf16>, vector<8x512xf32> -> vector<8x512xf32>
    %217 = arith.addf %213, %216 : vector<8x512xf32>
    %218 = vector.extract_strided_slice %217 {offsets = [0, 0], sizes = [8, 128], strides = [1, 1]} : vector<8x512xf32> to vector<8x128xf32>
    %cst_80 = arith.constant 5.000000e-01 : f32
    %219 = vector.broadcast %cst_80 : f32 to vector<8x128xf32>
    %220 = arith.mulf %219, %218 : vector<8x128xf32>
    %221 = math.tanh %220 : vector<8x128xf32>
    %cst_81 = arith.constant 5.000000e-01 : f32
    %222 = vector.broadcast %cst_81 : f32 to vector<8x128xf32>
    %223 = arith.mulf %222, %221 : vector<8x128xf32>
    %cst_82 = arith.constant 5.000000e-01 : f32
    %224 = vector.broadcast %cst_82 : f32 to vector<8x128xf32>
    %225 = arith.addf %223, %224 : vector<8x128xf32>
    %226 = vector.extract_strided_slice %217 {offsets = [0, 128], sizes = [8, 128], strides = [1, 1]} : vector<8x512xf32> to vector<8x128xf32>
    %cst_83 = arith.constant 5.000000e-01 : f32
    %227 = vector.broadcast %cst_83 : f32 to vector<8x128xf32>
    %228 = arith.mulf %227, %226 : vector<8x128xf32>
    %229 = math.tanh %228 : vector<8x128xf32>
    %cst_84 = arith.constant 5.000000e-01 : f32
    %230 = vector.broadcast %cst_84 : f32 to vector<8x128xf32>
    %231 = arith.mulf %230, %229 : vector<8x128xf32>
    %cst_85 = arith.constant 5.000000e-01 : f32
    %232 = vector.broadcast %cst_85 : f32 to vector<8x128xf32>
    %233 = arith.addf %231, %232 : vector<8x128xf32>
    %234 = vector.extract_strided_slice %217 {offsets = [0, 256], sizes = [8, 128], strides = [1, 1]} : vector<8x512xf32> to vector<8x128xf32>
    %235 = math.tanh %234 : vector<8x128xf32>
    %236 = vector.extract_strided_slice %217 {offsets = [0, 384], sizes = [8, 128], strides = [1, 1]} : vector<8x512xf32> to vector<8x128xf32>
    %cst_86 = arith.constant 5.000000e-01 : f32
    %237 = vector.broadcast %cst_86 : f32 to vector<8x128xf32>
    %238 = arith.mulf %237, %236 : vector<8x128xf32>
    %239 = math.tanh %238 : vector<8x128xf32>
    %cst_87 = arith.constant 5.000000e-01 : f32
    %240 = vector.broadcast %cst_87 : f32 to vector<8x128xf32>
    %241 = arith.mulf %240, %239 : vector<8x128xf32>
    %cst_88 = arith.constant 5.000000e-01 : f32
    %242 = vector.broadcast %cst_88 : f32 to vector<8x128xf32>
    %243 = arith.addf %241, %242 : vector<8x128xf32>
    %244 = arith.mulf %233, %205 : vector<8x128xf32>
    %245 = arith.mulf %225, %235 : vector<8x128xf32>
    %246 = arith.addf %244, %245 : vector<8x128xf32>
    %247 = math.tanh %246 : vector<8x128xf32>
    %248 = arith.mulf %243, %247 : vector<8x128xf32>
    %cst_89 = arith.constant 0.000000e+00 : f32
    %249 = vector.broadcast %cst_89 : f32 to vector<8x128xf32>
    %250 = arith.cmpf ogt, %248, %249 : vector<8x128xf32>
    %cst_90 = arith.constant 0.00999999977 : f32
    %251 = vector.broadcast %cst_90 : f32 to vector<8x128xf32>
    %252 = arith.mulf %251, %248 : vector<8x128xf32>
    %253 = arith.select %250, %248, %252 : vector<8x128xi1>, vector<8x128xf32>
    %254 = vector.extract_strided_slice %5 {offsets = [48, 0], sizes = [8, 512], strides = [1, 1]} : vector<64x512xf32> to vector<8x512xf32>
    %255 = arith.truncf %248 : vector<8x128xf32> to vector<8x128xbf16>
    %c0_91 = arith.constant 0 : index
    %c0_92 = arith.constant 0 : index
    %256 = vector.load %arg2[%c0_91, %c0_92] : memref<128x512xbf16, #tpu.memory_space<vmem>>, vector<128x512xbf16>
    %cst_93 = arith.constant dense<0.000000e+00> : vector<8x512xf32>
    %257 = tpu.matmul %255, %256, %cst_93 {dimension_numbers = #tpu.dot_dimension_numbers<[1], [0], [0], [1], [0, 0, 1, 1], [], []>} : vector<8x128xbf16>, vector<128x512xbf16>, vector<8x512xf32> -> vector<8x512xf32>
    %258 = arith.addf %254, %257 : vector<8x512xf32>
    %259 = vector.extract_strided_slice %258 {offsets = [0, 0], sizes = [8, 128], strides = [1, 1]} : vector<8x512xf32> to vector<8x128xf32>
    %cst_94 = arith.constant 5.000000e-01 : f32
    %260 = vector.broadcast %cst_94 : f32 to vector<8x128xf32>
    %261 = arith.mulf %260, %259 : vector<8x128xf32>
    %262 = math.tanh %261 : vector<8x128xf32>
    %cst_95 = arith.constant 5.000000e-01 : f32
    %263 = vector.broadcast %cst_95 : f32 to vector<8x128xf32>
    %264 = arith.mulf %263, %262 : vector<8x128xf32>
    %cst_96 = arith.constant 5.000000e-01 : f32
    %265 = vector.broadcast %cst_96 : f32 to vector<8x128xf32>
    %266 = arith.addf %264, %265 : vector<8x128xf32>
    %267 = vector.extract_strided_slice %258 {offsets = [0, 128], sizes = [8, 128], strides = [1, 1]} : vector<8x512xf32> to vector<8x128xf32>
    %cst_97 = arith.constant 5.000000e-01 : f32
    %268 = vector.broadcast %cst_97 : f32 to vector<8x128xf32>
    %269 = arith.mulf %268, %267 : vector<8x128xf32>
    %270 = math.tanh %269 : vector<8x128xf32>
    %cst_98 = arith.constant 5.000000e-01 : f32
    %271 = vector.broadcast %cst_98 : f32 to vector<8x128xf32>
    %272 = arith.mulf %271, %270 : vector<8x128xf32>
    %cst_99 = arith.constant 5.000000e-01 : f32
    %273 = vector.broadcast %cst_99 : f32 to vector<8x128xf32>
    %274 = arith.addf %272, %273 : vector<8x128xf32>
    %275 = vector.extract_strided_slice %258 {offsets = [0, 256], sizes = [8, 128], strides = [1, 1]} : vector<8x512xf32> to vector<8x128xf32>
    %276 = math.tanh %275 : vector<8x128xf32>
    %277 = vector.extract_strided_slice %258 {offsets = [0, 384], sizes = [8, 128], strides = [1, 1]} : vector<8x512xf32> to vector<8x128xf32>
    %cst_100 = arith.constant 5.000000e-01 : f32
    %278 = vector.broadcast %cst_100 : f32 to vector<8x128xf32>
    %279 = arith.mulf %278, %277 : vector<8x128xf32>
    %280 = math.tanh %279 : vector<8x128xf32>
    %cst_101 = arith.constant 5.000000e-01 : f32
    %281 = vector.broadcast %cst_101 : f32 to vector<8x128xf32>
    %282 = arith.mulf %281, %280 : vector<8x128xf32>
    %cst_102 = arith.constant 5.000000e-01 : f32
    %283 = vector.broadcast %cst_102 : f32 to vector<8x128xf32>
    %284 = arith.addf %282, %283 : vector<8x128xf32>
    %285 = arith.mulf %274, %246 : vector<8x128xf32>
    %286 = arith.mulf %266, %276 : vector<8x128xf32>
    %287 = arith.addf %285, %286 : vector<8x128xf32>
    %288 = math.tanh %287 : vector<8x128xf32>
    %289 = arith.mulf %284, %288 : vector<8x128xf32>
    %cst_103 = arith.constant 0.000000e+00 : f32
    %290 = vector.broadcast %cst_103 : f32 to vector<8x128xf32>
    %291 = arith.cmpf ogt, %289, %290 : vector<8x128xf32>
    %cst_104 = arith.constant 0.00999999977 : f32
    %292 = vector.broadcast %cst_104 : f32 to vector<8x128xf32>
    %293 = arith.mulf %292, %289 : vector<8x128xf32>
    %294 = arith.select %291, %289, %293 : vector<8x128xi1>, vector<8x128xf32>
    %295 = vector.extract_strided_slice %5 {offsets = [56, 0], sizes = [8, 512], strides = [1, 1]} : vector<64x512xf32> to vector<8x512xf32>
    %296 = arith.truncf %289 : vector<8x128xf32> to vector<8x128xbf16>
    %c0_105 = arith.constant 0 : index
    %c0_106 = arith.constant 0 : index
    %297 = vector.load %arg2[%c0_105, %c0_106] : memref<128x512xbf16, #tpu.memory_space<vmem>>, vector<128x512xbf16>
    %cst_107 = arith.constant dense<0.000000e+00> : vector<8x512xf32>
    %298 = tpu.matmul %296, %297, %cst_107 {dimension_numbers = #tpu.dot_dimension_numbers<[1], [0], [0], [1], [0, 0, 1, 1], [], []>} : vector<8x128xbf16>, vector<128x512xbf16>, vector<8x512xf32> -> vector<8x512xf32>
    %299 = arith.addf %295, %298 : vector<8x512xf32>
    %300 = vector.extract_strided_slice %299 {offsets = [0, 0], sizes = [8, 128], strides = [1, 1]} : vector<8x512xf32> to vector<8x128xf32>
    %cst_108 = arith.constant 5.000000e-01 : f32
    %301 = vector.broadcast %cst_108 : f32 to vector<8x128xf32>
    %302 = arith.mulf %301, %300 : vector<8x128xf32>
    %303 = math.tanh %302 : vector<8x128xf32>
    %cst_109 = arith.constant 5.000000e-01 : f32
    %304 = vector.broadcast %cst_109 : f32 to vector<8x128xf32>
    %305 = arith.mulf %304, %303 : vector<8x128xf32>
    %cst_110 = arith.constant 5.000000e-01 : f32
    %306 = vector.broadcast %cst_110 : f32 to vector<8x128xf32>
    %307 = arith.addf %305, %306 : vector<8x128xf32>
    %308 = vector.extract_strided_slice %299 {offsets = [0, 128], sizes = [8, 128], strides = [1, 1]} : vector<8x512xf32> to vector<8x128xf32>
    %cst_111 = arith.constant 5.000000e-01 : f32
    %309 = vector.broadcast %cst_111 : f32 to vector<8x128xf32>
    %310 = arith.mulf %309, %308 : vector<8x128xf32>
    %311 = math.tanh %310 : vector<8x128xf32>
    %cst_112 = arith.constant 5.000000e-01 : f32
    %312 = vector.broadcast %cst_112 : f32 to vector<8x128xf32>
    %313 = arith.mulf %312, %311 : vector<8x128xf32>
    %cst_113 = arith.constant 5.000000e-01 : f32
    %314 = vector.broadcast %cst_113 : f32 to vector<8x128xf32>
    %315 = arith.addf %313, %314 : vector<8x128xf32>
    %316 = vector.extract_strided_slice %299 {offsets = [0, 256], sizes = [8, 128], strides = [1, 1]} : vector<8x512xf32> to vector<8x128xf32>
    %317 = math.tanh %316 : vector<8x128xf32>
    %318 = vector.extract_strided_slice %299 {offsets = [0, 384], sizes = [8, 128], strides = [1, 1]} : vector<8x512xf32> to vector<8x128xf32>
    %cst_114 = arith.constant 5.000000e-01 : f32
    %319 = vector.broadcast %cst_114 : f32 to vector<8x128xf32>
    %320 = arith.mulf %319, %318 : vector<8x128xf32>
    %321 = math.tanh %320 : vector<8x128xf32>
    %cst_115 = arith.constant 5.000000e-01 : f32
    %322 = vector.broadcast %cst_115 : f32 to vector<8x128xf32>
    %323 = arith.mulf %322, %321 : vector<8x128xf32>
    %cst_116 = arith.constant 5.000000e-01 : f32
    %324 = vector.broadcast %cst_116 : f32 to vector<8x128xf32>
    %325 = arith.addf %323, %324 : vector<8x128xf32>
    %326 = arith.mulf %315, %287 : vector<8x128xf32>
    %327 = arith.mulf %307, %317 : vector<8x128xf32>
    %328 = arith.addf %326, %327 : vector<8x128xf32>
    %329 = math.tanh %328 : vector<8x128xf32>
    %330 = arith.mulf %325, %329 : vector<8x128xf32>
    %cst_117 = arith.constant 0.000000e+00 : f32
    %331 = vector.broadcast %cst_117 : f32 to vector<8x128xf32>
    %332 = arith.cmpf ogt, %330, %331 : vector<8x128xf32>
    %cst_118 = arith.constant 0.00999999977 : f32
    %333 = vector.broadcast %cst_118 : f32 to vector<8x128xf32>
    %334 = arith.mulf %333, %330 : vector<8x128xf32>
    %335 = arith.select %332, %330, %334 : vector<8x128xi1>, vector<8x128xf32>
    %336 = tpu.concatenate %48, %89, %130, %171, %212, %253, %294, %335 in 1 : vector<8x128xf32>, vector<8x128xf32>, vector<8x128xf32>, vector<8x128xf32>, vector<8x128xf32>, vector<8x128xf32>, vector<8x128xf32>, vector<8x128xf32> -> vector<8x1024xf32>
    %337 = arith.truncf %336 : vector<8x1024xf32> to vector<8x1024xbf16>
    %c0_119 = arith.constant 0 : index
    %c0_120 = arith.constant 0 : index
    %338 = vector.load %arg4[%c0_119, %c0_120] : memref<1024x128xbf16, #tpu.memory_space<vmem>>, vector<1024x128xbf16>
    %cst_121 = arith.constant dense<0.000000e+00> : vector<8x128xf32>
    %339 = tpu.matmul %337, %338, %cst_121 {dimension_numbers = #tpu.dot_dimension_numbers<[1], [0], [0], [1], [0, 0, 1, 1], [], []>} : vector<8x1024xbf16>, vector<1024x128xbf16>, vector<8x128xf32> -> vector<8x128xf32>
    %c0_122 = arith.constant 0 : index
    %c0_123 = arith.constant 0 : index
    %340 = vector.load %arg5[%c0_122, %c0_123] : memref<1x128xf32, #tpu.memory_space<vmem>>, vector<1x128xf32>
    %341 = vector.broadcast %340 : vector<1x128xf32> to vector<8x128xf32>
    %342 = arith.addf %339, %341 : vector<8x128xf32>
    %c0_124 = arith.constant 0 : index
    %c0_125 = arith.constant 0 : index
    %343 = vector.load %arg6[%c0_124, %c0_125] : memref<8x128xf32, #tpu.memory_space<vmem>>, vector<8x128xf32>
    tpu.vector_store %arg6[%c0_124, %c0_125], %342 {strides = array<i32>} : memref<8x128xf32, #tpu.memory_space<vmem>>, vector<8x128xf32>,
    return
  }
}

</mosaic_0001>

<bundles_post_ra>
// kernel: tpu_custom_call.1
= control target key start
LH: loop header
LB: loop body
LE: loop exit
PB: predicated region body
PF: predicated region fallthrough
CT: control target
= control target key end

     0   :  { %11 = vsyncpa [#allocation3], 0  ;;  %s3050_s0 = inlined_call_operand.vmem [shape: bf16[64,16], index: 0, kind: input, shape index: {}]   ;;  %s3051_s1 = inlined_call_operand.vmem [shape: bf16[16,512], index: 1, kind: input, shape index: {}]   ;;  %s3052_s2 = inlined_call_operand.hbm [shape: bf16[128,512], index: 2, kind: input, shape index: {}]   ;;  %s3053_s3 = inlined_call_operand.vmem [shape: f32[1,512], index: 3, kind: input, shape index: {}]   ;;  %s3054_s4 = inlined_call_operand.hbm [shape: bf16[1024,128], index: 4, kind: input, shape index: {}]   ;;  %s3055_s5 = inlined_call_operand.vmem [shape: f32[1,128], index: 5, kind: input, shape index: {}]   ;;  %s3056_s6 = inlined_call_operand.hbm [shape: f32[8,128], index: 6, kind: output, shape index: {}]  }
   0x1   :  { %12 = vsyncpa [#allocation6], 0 }
   0x2   :  { %13 = vsyncpa [#allocation4], 0  ;;  %s22_s23 = sshll.u32 %s3052_s2, 4  ;;  %s2413_s24 = smov [#allocation2]   ;;  %s23_s23 = int_to_ptr.hbm [resolvable:$true] %s22_s23 }
   0x3   :  { %s24_s25 = sshll.u32 %s2413_s24, 4  ;;  %s37_s28 = sshll.u32 %s3054_s4, 4  ;;  %s25_s25 = int_to_ptr.vmem [resolvable:$true] %s24_s25  ;;  %s38_s28 = int_to_ptr.hbm [resolvable:$true] %s37_s28 }
   0x4   :  { %s2414_s29 = smov 256   ;;  %s2415_s30 = smov 16  }
   0x5   :  { %30 = dma.hbm_to_vmem [thread:$0]  %s23_s23, 4096, %s25_s25, [#allocation3], %s2414_s29, %s2414_s29, %s2415_s30  }
   0x6   :  { %s2416_s7 = smov [#allocation5]   ;;  %s2417_s9 = smov 64  }
   0x7   :  { %s39_s8 = sshll.u32 %s2416_s7, 4  ;;  %s2418_s10 = smov 4   ;;  %s40_s8 = int_to_ptr.vmem [resolvable:$true] %s39_s8 }
   0x8   :  { %45 = dma.hbm_to_vmem [thread:$0]  %s38_s28, 8192, %s40_s8, [#allocation6], %s2417_s9, %s2417_s9, %s2418_s10  }
   0x9   :  { %2407 = dma.done.wait [#allocation3], 4096  }
   0xa   :  { %2408 = vsyncadd [#allocation3], 4294963200 }
   0xb   :  { %2409 = dma.done.wait [#allocation6], 8192  }
   0xc   :  { %2410 = vsyncadd [#allocation6], 4294959104  ;;  %v1728_v0 = vld [vmem:[%s3051_s1] sm:$0xf]  ;;  %v2148_v1 = vld [vmem:[%s3051_s1 + $0xc] sm:$0xf0] }
   0xd   :  { %v2146_v2 = vld [vmem:[%s3051_s1 + $0x4] sm:$0xf]  ;;  %v1729_v3 = vor.u32 %v2148_v1, %v1728_v0  ;;  %v1730_v4 = vld [vmem:[%s3051_s1 + $0x10] sm:$0xf0]  ;;  %v1736_v5 = vld [vmem:[%s3051_s1 + $0x8] sm:$0xf] }
   0xe   :  { %v2149_v6 = vld [vmem:[%s3051_s1 + $0x14] sm:$0xf0]  ;;  %v1733_v7 = vor.u32 %v2146_v2, %v1730_v4  ;;  %v2147_v9 = vld [vmem:[%s3051_s1 + $0xc] sm:$0xf]  ;;  %v1738_v10 = vld [vmem:[%s3051_s1 + $0x18] sm:$0xf0] }
   0xf   :  { %v1737_v8 = vor.u32 %v2149_v6, %v1736_v5  ;;  %v2142_v11 = vld [vmem:[%s3050_s0] sm:$0xff]  ;;  %vm119_vm0 = vcmask 130048   ;;  %139 = vmatpush.bf16.msra.mxu0 %v1729_v3  ;;  %v1741_v12 = vor.u32 %v2147_v9, %v1738_v10  ;;  %v2180_v14 = vld [vmem:[#allocation2 + $0xec] sm:$0xf0]  ;;  %v1874_v17 = vld [vmem:[#allocation2 + $0xf0] sm:$0xf0] }
  0x10   :  { %v1872_v13 = vld [vmem:[#allocation2 + $0xe0] sm:$0xf]  ;;  %v2178_v15 = vld [vmem:[#allocation2 + $0xe4] sm:$0xf]  ;;  %168 = vmatpush.bf16.msra.mxu1 %v1733_v7  ;;  %v1880_v18 = vld [vmem:[#allocation2 + $0xe8] sm:$0xf] }
  0x11   :  { %197 = vmatpush.bf16.msra.mxu2 %v1737_v8  ;;  %v2489_v16 = vor.u32 %v2180_v14, %v1872_v13  ;;  %v2181_v19 = vld [vmem:[#allocation2 + $0xf4] sm:$0xf0]  ;;  %226 = vmatpush.bf16.msra.mxu3 %v1741_v12  ;;  %v2491_v20 = vor.u32 %v2178_v15, %v1874_v17  ;;  %v2179_v22 = vld [vmem:[#allocation2 + $0xec] sm:$0xf]  ;;  %v1882_v23 = vld [vmem:[#allocation2 + $0xf8] sm:$0xf0] }
  0x12   :  { %v2493_v21 = vor.u32 %v2181_v19, %v1880_v18  ;;  %v1856_v24 = vld [vmem:[#allocation2 + $0xc0] sm:$0xf]  ;;  %1742 = vmatmul.msk.bf16.vlgmr.msra.gmra.mxu0 %vm119_vm0, %v2142_v11  ;;  %v2496_v25 = vor.u32 %v2179_v22, %v1882_v23  ;;  %v2176_v26 = vld [vmem:[#allocation2 + $0xcc] sm:$0xf0]  ;;  %v2174_v27 = vld [vmem:[#allocation2 + $0xc4] sm:$0xf] }
  0x13   :  { %v1858_v28 = vld [vmem:[#allocation2 + $0xd0] sm:$0xf0]  ;;  %1746 = vmatmul.msk.bf16.vlgmr.msra.gmra.mxu1 %vm119_vm0, %v2142_v11  ;;  %v1864_v29 = vld [vmem:[#allocation2 + $0xc8] sm:$0xf]  ;;  %v2177_v30 = vld [vmem:[#allocation2 + $0xd4] sm:$0xf0]  ;;  %440 = vmatpush.bf16.msrb.mxu0 %v2489_v16  ;;  %v2502_v32 = vor.u32 %v2176_v26, %v1856_v24 }
  0x14   :  { %1750 = vmatmul.msk.bf16.vlgmr.msra.gmra.mxu2 %vm119_vm0, %v2142_v11  ;;  %v2175_v31 = vld [vmem:[#allocation2 + $0xcc] sm:$0xf]  ;;  %1754 = vmatmul.msk.bf16.vlgmr.msra.gmra.mxu3 %vm119_vm0, %v2142_v11  ;;  %v1866_v33 = vld [vmem:[#allocation2 + $0xd8] sm:$0xf0]  ;;  %v2506_v34 = vor.u32 %v2174_v27, %v1858_v28  ;;  %v2508_v35 = vor.u32 %v2177_v30, %v1864_v29  ;;  %v1840_v36 = vld [vmem:[#allocation2 + $0xa0] sm:$0xf] }
  0x15   :  { %453 = vmatpush.bf16.msrb.mxu1 %v2491_v20  ;;  %466 = vmatpush.bf16.msrb.mxu2 %v2493_v21  ;;  %v2172_v37 = vld [vmem:[#allocation2 + $0xac] sm:$0xf0]  ;;  %v2170_v38 = vld [vmem:[#allocation2 + $0xa4] sm:$0xf]  ;;  %v2511_v39 = vor.u32 %v2175_v31, %v1866_v33  ;;  %v1842_v40 = vld [vmem:[#allocation2 + $0xb0] sm:$0xf0] }
  0x16   :  { %479 = vmatpush.bf16.msrb.mxu3 %v2496_v25  ;;  %v1848_v41 = vld [vmem:[#allocation2 + $0xa8] sm:$0xf]  ;;  %v2173_v42 = vld [vmem:[#allocation2 + $0xb4] sm:$0xf0]  ;;  %v2171_v43 = vld [vmem:[#allocation2 + $0xac] sm:$0xf]  ;;  %v2514_v45 = vor.u32 %v2172_v37, %v1840_v36  ;;  %v2518_v46 = vor.u32 %v2170_v38, %v1842_v40 }
  0x17   :  { %v1850_v44 = vld [vmem:[#allocation2 + $0xb8] sm:$0xf0]  ;;  %441 = vmatpush.bf16.msrb.mxu0 %v2502_v32  ;;  %v2520_v47 = vor.u32 %v2173_v42, %v1848_v41  ;;  %v1824_v48 = vld [vmem:[#allocation2 + $0x80] sm:$0xf]  ;;  %v2168_v49 = vld [vmem:[#allocation2 + $0x8c] sm:$0xf0] }
  0x18   :  { %v2166_v50 = vld [vmem:[#allocation2 + $0x84] sm:$0xf]  ;;  %v2523_v51 = vor.u32 %v2171_v43, %v1850_v44  ;;  %v1826_v52 = vld [vmem:[#allocation2 + $0x90] sm:$0xf0]  ;;  %v1832_v53 = vld [vmem:[#allocation2 + $0x88] sm:$0xf]  ;;  %v2529_v58 = vor.u32 %v2168_v49, %v1824_v48 }
  0x19   :  { %454 = vmatpush.bf16.msrb.mxu1 %v2506_v34  ;;  %467 = vmatpush.bf16.msrb.mxu2 %v2508_v35  ;;  %v2169_v54 = vld [vmem:[#allocation2 + $0x94] sm:$0xf0]  ;;  %v2167_v55 = vld [vmem:[#allocation2 + $0x8c] sm:$0xf]  ;;  %v1834_v56 = vld [vmem:[#allocation2 + $0x98] sm:$0xf0]  ;;  %v2533_v59 = vor.u32 %v2166_v50, %v1826_v52 }
  0x1a   :  { %480 = vmatpush.bf16.msrb.mxu3 %v2511_v39  ;;  %v2143_v57 = vld [vmem:[%s3050_s0 + $0x8] sm:$0xff]  ;;  %v2535_v60 = vor.u32 %v2169_v54, %v1832_v53  ;;  %v1808_v61 = vld [vmem:[#allocation2 + $0x60] sm:$0xf]  ;;  %v2164_v62 = vld [vmem:[#allocation2 + $0x6c] sm:$0xf0]  ;;  %v2538_v0 = vor.u32 %v2167_v55, %v1834_v56  ;;  %s1699_s12 = sshll.u32 %s3056_s6, 4  ;;  %s1700_s12 = int_to_ptr.hbm [resolvable:$true] %s1699_s12 }
  0x1b   :  { %442 = vmatpush.bf16.msrb.mxu0 %v2514_v45  ;;  %v2162_v63 = vld [vmem:[#allocation2 + $0x64] sm:$0xf]  ;;  %v1810_v1 = vld [vmem:[#allocation2 + $0x70] sm:$0xf0]  ;;  %v1816_v2 = vld [vmem:[#allocation2 + $0x68] sm:$0xf]  ;;  %v2541_v6 = vor.u32 %v2164_v62, %v1808_v61 }
  0x1c   :  { %v2165_v3 = vld [vmem:[#allocation2 + $0x74] sm:$0xf0]  ;;  %v2163_v4 = vld [vmem:[#allocation2 + $0x6c] sm:$0xf]  ;;  %v1818_v5 = vld [vmem:[#allocation2 + $0x78] sm:$0xf0]  ;;  %v2545_v7 = vor.u32 %v2162_v63, %v1810_v1 }
  0x1d   :  { %455 = vmatpush.bf16.msrb.mxu1 %v2518_v46  ;;  %468 = vmatpush.bf16.msrb.mxu2 %v2520_v47  ;;  %v2547_v8 = vor.u32 %v2165_v3, %v1816_v2  ;;  %v1792_v9 = vld [vmem:[#allocation2 + $0x40] sm:$0xf]  ;;  %v2160_v10 = vld [vmem:[#allocation2 + $0x4c] sm:$0xf0]  ;;  %v2158_v11 = vld [vmem:[#allocation2 + $0x44] sm:$0xf]  ;;  %v2551_v12 = vor.u32 %v2163_v4, %v1818_v5 }
  0x1e   :  { %481 = vmatpush.bf16.msrb.mxu3 %v2523_v51  ;;  %v1794_v13 = vld [vmem:[#allocation2 + $0x50] sm:$0xf0]  ;;  %v1800_v14 = vld [vmem:[#allocation2 + $0x48] sm:$0xf]  ;;  %v2161_v15 = vld [vmem:[#allocation2 + $0x54] sm:$0xf0]  ;;  %v2557_v19 = vor.u32 %v2160_v10, %v1792_v9 }
  0x1f   :  { %443 = vmatpush.bf16.msrb.mxu0 %v2529_v58  ;;  %v2159_v17 = vld [vmem:[#allocation2 + $0x4c] sm:$0xf]  ;;  %v1802_v18 = vld [vmem:[#allocation2 + $0x58] sm:$0xf0]  ;;  %v2561_v22 = vor.u32 %v2158_v11, %v1794_v13  ;;  %v2563_v23 = vor.u32 %v2161_v15, %v1800_v14  ;;  %v1776_v24 = vld [vmem:[#allocation2 + $0x20] sm:$0xf] }
  0x20   :  { %v2156_v26 = vld [vmem:[#allocation2 + $0x2c] sm:$0xf0]  ;;  %v2154_v27 = vld [vmem:[#allocation2 + $0x24] sm:$0xf]  ;;  %v2566_v28 = vor.u32 %v2159_v17, %v1802_v18  ;;  %v1778_v29 = vld [vmem:[#allocation2 + $0x30] sm:$0xf0] }
  0x21   :  { %456 = vmatpush.bf16.msrb.mxu1 %v2533_v59  ;;  %469 = vmatpush.bf16.msrb.mxu2 %v2535_v60  ;;  %v1784_v30 = vld [vmem:[#allocation2 + $0x28] sm:$0xf]  ;;  %v2157_v31 = vld [vmem:[#allocation2 + $0x34] sm:$0xf0]  ;;  %v2155_v33 = vld [vmem:[#allocation2 + $0x2c] sm:$0xf]  ;;  %v2569_v37 = vor.u32 %v2156_v26, %v1776_v24  ;;  %v2573_v38 = vor.u32 %v2154_v27, %v1778_v29 }
  0x22   :  { %1743 = vmatmul.msk.bf16.gmra.mxu0 %vm119_vm0, %v2143_v57  ;;  %482 = vmatpush.bf16.msrb.mxu3 %v2538_v0  ;;  %v1786_v36 = vld [vmem:[#allocation2 + $0x38] sm:$0xf0]  ;;  %v2575_v40 = vor.u32 %v2157_v31, %v1784_v30  ;;  %v1760_v41 = vld [vmem:[#allocation2] sm:$0xf]  ;;  %v2152_v42 = vld [vmem:[#allocation2 + $0xc] sm:$0xf0] }
  0x23   :  { %1747 = vmatmul.msk.bf16.gmra.mxu1 %vm119_vm0, %v2143_v57  ;;  %444 = vmatpush.bf16.msrb.mxu0 %v2541_v6  ;;  %v2150_v43 = vld [vmem:[#allocation2 + $0x4] sm:$0xf]  ;;  %v2578_v44 = vor.u32 %v2155_v33, %v1786_v36  ;;  %v1762_v48 = vld [vmem:[#allocation2 + $0x10] sm:$0xf0]  ;;  %v1768_v49 = vld [vmem:[#allocation2 + $0x8] sm:$0xf]  ;;  %v2581_v54 = vor.u32 %v2152_v42, %v1760_v41 }
  0x24   :  { %1751 = vmatmul.msk.bf16.gmra.mxu2 %vm119_vm0, %v2143_v57  ;;  %1755 = vmatmul.msk.bf16.gmra.mxu3 %vm119_vm0, %v2143_v57  ;;  %v2153_v50 = vld [vmem:[#allocation2 + $0x14] sm:$0xf0]  ;;  %v2151_v52 = vld [vmem:[#allocation2 + $0xc] sm:$0xf]  ;;  %v1770_v53 = vld [vmem:[#allocation2 + $0x18] sm:$0xf0]  ;;  %v2585_v55 = vor.u32 %v2150_v43, %v1762_v48 }
  0x25   :  { %457 = vmatpush.bf16.msrb.mxu1 %v2545_v7  ;;  %470 = vmatpush.bf16.msrb.mxu2 %v2547_v8  ;;  %v2587_v56 = vor.u32 %v2153_v50, %v1768_v49  ;;  %v2144_v57 = vld [vmem:[%s3050_s0 + $0x10] sm:$0xff]  ;;  %v2593_v61 = vor.u32 %v2151_v52, %v1770_v53  ;;  %v2145_v62 = vld [vmem:[%s3050_s0 + $0x18] sm:$0xff]  ;;  %v2419_v63 = vmov 0   ;;  %v69_v10 = vld [vmem:[%s3053_s3] sm:$0xf] }
  0x26   :  { %483 = vmatpush.bf16.msrb.mxu3 %v2551_v12  ;;  %v2685_v11 = vperm.slane %v69_v10, 0  ;;  %v2689_v14 = vperm.slane %v69_v10, 1  ;;  %v2699_v27 = vperm.slane %v69_v10, 2  ;;  %v2701_v29 = vperm.slane %v69_v10, 3 }
  0x27   :  { %445 = vmatpush.bf16.msrb.mxu0 %v2557_v19 }
  0x29   :  { %458 = vmatpush.bf16.msrb.mxu1 %v2561_v22  ;;  %471 = vmatpush.bf16.msrb.mxu2 %v2563_v23 }
  0x2a   :  { %484 = vmatpush.bf16.msrb.mxu3 %v2566_v28 }
  0x2b   :  { %446 = vmatpush.bf16.msrb.mxu0 %v2569_v37 }
  0x2d   :  { %459 = vmatpush.bf16.msrb.mxu1 %v2573_v38  ;;  %472 = vmatpush.bf16.msrb.mxu2 %v2575_v40 }
  0x2e   :  { %485 = vmatpush.bf16.msrb.mxu3 %v2578_v44 }
  0x2f   :  { %447 = vmatpush.bf16.msrb.mxu0 %v2581_v54 }
  0x31   :  { %460 = vmatpush.bf16.msrb.mxu1 %v2585_v55  ;;  %473 = vmatpush.bf16.msrb.mxu2 %v2587_v56 }
  0x32   :  { %1744 = vmatmul.msk.bf16.gmra.mxu0 %vm119_vm0, %v2144_v57  ;;  %486 = vmatpush.bf16.msrb.mxu3 %v2593_v61 }
  0x33   :  { %1748 = vmatmul.msk.bf16.gmra.mxu1 %vm119_vm0, %v2144_v57  ;;  %518 = vmatpush.bf16.msra.mxu0 %v2489_v16 }
  0x34   :  { %1752 = vmatmul.msk.bf16.gmra.mxu2 %vm119_vm0, %v2144_v57  ;;  %1756 = vmatmul.msk.bf16.gmra.mxu3 %vm119_vm0, %v2144_v57 }
  0x35   :  { %531 = vmatpush.bf16.msra.mxu1 %v2491_v20  ;;  %544 = vmatpush.bf16.msra.mxu2 %v2493_v21 }
  0x36   :  { %557 = vmatpush.bf16.msra.mxu3 %v2496_v25 }
  0x37   :  { %519 = vmatpush.bf16.msra.mxu0 %v2502_v32 }
  0x39   :  { %532 = vmatpush.bf16.msra.mxu1 %v2506_v34  ;;  %545 = vmatpush.bf16.msra.mxu2 %v2508_v35 }
  0x3a   :  { %558 = vmatpush.bf16.msra.mxu3 %v2511_v39 }
  0x3b   :  { %520 = vmatpush.bf16.msra.mxu0 %v2514_v45 }
  0x3d   :  { %533 = vmatpush.bf16.msra.mxu1 %v2518_v46  ;;  %546 = vmatpush.bf16.msra.mxu2 %v2520_v47 }
  0x3e   :  { %559 = vmatpush.bf16.msra.mxu3 %v2523_v51 }
  0x3f   :  { %521 = vmatpush.bf16.msra.mxu0 %v2529_v58 }
  0x41   :  { %534 = vmatpush.bf16.msra.mxu1 %v2533_v59  ;;  %547 = vmatpush.bf16.msra.mxu2 %v2535_v60 }
  0x42   :  { %1745 = vmatmul.msk.bf16.gmra.mxu0 %vm119_vm0, %v2145_v62  ;;  %560 = vmatpush.bf16.msra.mxu3 %v2538_v0 }
  0x43   :  { %1749 = vmatmul.msk.bf16.gmra.mxu1 %vm119_vm0, %v2145_v62  ;;  %522 = vmatpush.bf16.msra.mxu0 %v2541_v6 }
  0x44   :  { %1753 = vmatmul.msk.bf16.gmra.mxu2 %vm119_vm0, %v2145_v62  ;;  %1757 = vmatmul.msk.bf16.gmra.mxu3 %vm119_vm0, %v2145_v62 }
  0x45   :  { %535 = vmatpush.bf16.msra.mxu1 %v2545_v7  ;;  %548 = vmatpush.bf16.msra.mxu2 %v2547_v8 }
  0x46   :  { %561 = vmatpush.bf16.msra.mxu3 %v2551_v12 }
  0x47   :  { %523 = vmatpush.bf16.msra.mxu0 %v2557_v19 }
  0x49   :  { %536 = vmatpush.bf16.msra.mxu1 %v2561_v22  ;;  %549 = vmatpush.bf16.msra.mxu2 %v2563_v23 }
  0x4a   :  { %562 = vmatpush.bf16.msra.mxu3 %v2566_v28 }
  0x4b   :  { %524 = vmatpush.bf16.msra.mxu0 %v2569_v37 }
  0x4d   :  { %537 = vmatpush.bf16.msra.mxu1 %v2573_v38  ;;  %550 = vmatpush.bf16.msra.mxu2 %v2575_v40 }
  0x4e   :  { %563 = vmatpush.bf16.msra.mxu3 %v2578_v44 }
  0x4f   :  { %525 = vmatpush.bf16.msra.mxu0 %v2581_v54 }
  0x51   :  { %538 = vmatpush.bf16.msra.mxu1 %v2585_v55  ;;  %551 = vmatpush.bf16.msra.mxu2 %v2587_v56 }
  0x52   :  { %448 = vmatmul.bf16.vlgmr.msrb.gmra.mxu0 %v2419_v63  ;;  %564 = vmatpush.bf16.msra.mxu3 %v2593_v61 }
  0x53   :  { %461 = vmatmul.bf16.vlgmr.msrb.gmra.mxu1 %v2419_v63  ;;  %596 = vmatpush.bf16.msrb.mxu0 %v2489_v16 }
  0x54   :  { %474 = vmatmul.bf16.vlgmr.msrb.gmra.mxu2 %v2419_v63  ;;  %487 = vmatmul.bf16.vlgmr.msrb.gmra.mxu3 %v2419_v63 }
  0x55   :  { %609 = vmatpush.bf16.msrb.mxu1 %v2491_v20  ;;  %622 = vmatpush.bf16.msrb.mxu2 %v2493_v21 }
  0x56   :  { %635 = vmatpush.bf16.msrb.mxu3 %v2496_v25 }
  0x57   :  { %597 = vmatpush.bf16.msrb.mxu0 %v2502_v32 }
  0x59   :  { %610 = vmatpush.bf16.msrb.mxu1 %v2506_v34  ;;  %623 = vmatpush.bf16.msrb.mxu2 %v2508_v35 }
  0x5a   :  { %636 = vmatpush.bf16.msrb.mxu3 %v2511_v39 }
  0x5b   :  { %598 = vmatpush.bf16.msrb.mxu0 %v2514_v45 }
  0x5d   :  { %611 = vmatpush.bf16.msrb.mxu1 %v2518_v46  ;;  %624 = vmatpush.bf16.msrb.mxu2 %v2520_v47 }
  0x5e   :  { %637 = vmatpush.bf16.msrb.mxu3 %v2523_v51 }
  0x5f   :  { %599 = vmatpush.bf16.msrb.mxu0 %v2529_v58 }
  0x61   :  { %612 = vmatpush.bf16.msrb.mxu1 %v2533_v59  ;;  %625 = vmatpush.bf16.msrb.mxu2 %v2535_v60 }
  0x62   :  { %638 = vmatpush.bf16.msrb.mxu3 %v2538_v0 }
  0x63   :  { %600 = vmatpush.bf16.msrb.mxu0 %v2541_v6 }
  0x65   :  { %613 = vmatpush.bf16.msrb.mxu1 %v2545_v7  ;;  %626 = vmatpush.bf16.msrb.mxu2 %v2547_v8 }
  0x66   :  { %639 = vmatpush.bf16.msrb.mxu3 %v2551_v12 }
  0x67   :  { %601 = vmatpush.bf16.msrb.mxu0 %v2557_v19 }
  0x69   :  { %614 = vmatpush.bf16.msrb.mxu1 %v2561_v22  ;;  %627 = vmatpush.bf16.msrb.mxu2 %v2563_v23 }
  0x6a   :  { %640 = vmatpush.bf16.msrb.mxu3 %v2566_v28 }
  0x6b   :  { %602 = vmatpush.bf16.msrb.mxu0 %v2569_v37 }
  0x6d   :  { %615 = vmatpush.bf16.msrb.mxu1 %v2573_v38  ;;  %628 = vmatpush.bf16.msrb.mxu2 %v2575_v40 }
  0x6e   :  { %641 = vmatpush.bf16.msrb.mxu3 %v2578_v44 }
  0x6f   :  { %603 = vmatpush.bf16.msrb.mxu0 %v2581_v54 }
  0x71   :  { %616 = vmatpush.bf16.msrb.mxu1 %v2585_v55  ;;  %629 = vmatpush.bf16.msrb.mxu2 %v2587_v56 }
  0x72   :  { %642 = vmatpush.bf16.msrb.mxu3 %v2593_v61 }
  0x8f   :  { %v141_v1 = vpop.f32.mrf.mxu0 }
  0x90   :  { %v170_v2 = vpop.f32.mrf.mxu1 }
  0x97   :  { %v2674_v3 = vpop.f32.mrf.mxu2  ;;  %v2676_v4 = vpop.f32.mrf.mxu3 }
  0x98   :  { %v2678_v5 = vpop.f32.mrf.mxu0  ;;  %v2680_v9 = vpop.f32.mrf.mxu1 }
  0x9f   :  { %v2687_v13 = vpop.f32.mrf.mxu2  ;;  %v2691_v15 = vpop.f32.mrf.mxu3 }
  0xa0   :  { %v146_v17 = vpop.f32.mrf.mxu0  ;;  %v175_v24 = vpop.f32.mrf.mxu1 }
  0xa1   :  { %v2694_v18 = vadd.f32 %v146_v17, %v2685_v11  ;;  %v2697_v26 = vadd.f32 %v175_v24, %v2689_v14 }
  0xa7   :  { %v204_v30 = vpop.f32.mrf.mxu2  ;;  %v233_v33 = vpop.f32.mrf.mxu3 }
  0xa8   :  { %v2704_v31 = vadd.f32 %v204_v30, %v2699_v27  ;;  %v2706_v36 = vpop.f32.mrf.mxu0  ;;  %v2709_v41 = vadd.f32 %v233_v33, %v2701_v29  ;;  %v2711_v42 = vpop.f32.mrf.mxu1 }
  0xa9   :  { %3057 = vst [vmem:[#allocation11_spill] sm:$0xff] %v2706_v36 }
  0xaa   :  { %3058 = vst [vmem:[#allocation12_spill] sm:$0xff] %v2709_v41 }
  0xab   :  { %3059 = vst [vmem:[#allocation13_spill] sm:$0xff] %v2711_v42 }
  0xaf   :  { %v2713_v43 = vpop.f32.mrf.mxu2  ;;  %v2715_v48 = vpop.f32.mrf.mxu3 }
  0xb0   :  { %3060 = vst [vmem:[#allocation14_spill] sm:$0xff] %v2713_v43  ;;  %v151_v49 = vpop.f32.mrf.mxu0  ;;  %v180_v52 = vpop.f32.mrf.mxu1 }
  0xb1   :  { %3061 = vst [vmem:[#allocation15_spill] sm:$0xff] %v2715_v48  ;;  %v2718_v50 = vadd.f32 %v151_v49, %v2685_v11  ;;  %v2721_v53 = vadd.f32 %v180_v52, %v2689_v14 }
  0xb3   :  { %3062 = vst [vmem:[#allocation16_spill] sm:$0xff] %v2718_v50 }
  0xb4   :  { %3063 = vst [vmem:[#allocation17_spill] sm:$0xff] %v2721_v53 }
  0xb7   :  { %v209_v57 = vpop.f32.mrf.mxu2  ;;  %v238_v63 = vpop.f32.mrf.mxu3 }
  0xb8   :  { %v2724_v62 = vadd.f32 %v209_v57, %v2699_v27  ;;  %v153_v10 = vpop.f32.mrf.mxu0  ;;  %v2727_v17 = vadd.f32 %v238_v63, %v2701_v29  ;;  %v182_v30 = vpop.f32.mrf.mxu1 }
  0xb9   :  { %v2730_v24 = vadd.f32 %v153_v10, %v2685_v11  ;;  %v2733_v33 = vadd.f32 %v182_v30, %v2689_v14 }
  0xba   :  { %3064 = vst [vmem:[#allocation18_spill] sm:$0xff] %v2724_v62 }
  0xbb   :  { %3065 = vst [vmem:[#allocation19_spill] sm:$0xff] %v2727_v17 }
  0xbc   :  { %3066 = vst [vmem:[#allocation20_spill] sm:$0xff] %v2730_v24 }
  0xbd   :  { %3067 = vst [vmem:[#allocation21_spill] sm:$0xff] %v2733_v33 }
  0xbf   :  { %v211_v49 = vpop.f32.mrf.mxu2  ;;  %v240_v53 = vpop.f32.mrf.mxu3 }
  0xc0   :  { %v2736_v52 = vadd.f32 %v211_v49, %v2699_v27  ;;  %v156_v50 = vpop.f32.mrf.mxu0  ;;  %v2739_v57 = vadd.f32 %v240_v53, %v2701_v29  ;;  %v185_v63 = vpop.f32.mrf.mxu1 }
  0xc1   :  { %v2742_v62 = vadd.f32 %v156_v50, %v2685_v11  ;;  %v2745_v10 = vadd.f32 %v185_v63, %v2689_v14 }
  0xc2   :  { %3068 = vst [vmem:[#allocation22_spill] sm:$0xff] %v2736_v52 }
  0xc3   :  { %3069 = vst [vmem:[#allocation23_spill] sm:$0xff] %v2739_v57 }
  0xc4   :  { %3070 = vst [vmem:[#allocation24_spill] sm:$0xff] %v2742_v62  ;;  %v142_v62 = vadd.f32 %v141_v1, %v2685_v11  ;;  %v200_v1 = vadd.f32 %v2674_v3, %v2699_v27 }
  0xc5   :  { %3071 = vst [vmem:[#allocation25_spill] sm:$0xff] %v2745_v10  ;;  %v171_v10 = vadd.f32 %v170_v2, %v2689_v14  ;;  %v229_v2 = vadd.f32 %v2676_v4, %v2701_v29 }
  0xc7   :  { %v214_v24 = vpop.f32.mrf.mxu2  ;;  %v243_v33 = vpop.f32.mrf.mxu3 }
  0xc8   :  { %v2748_v30 = vadd.f32 %v214_v24, %v2699_v27  ;;  %v158_v17 = vpop.f32.mrf.mxu0  ;;  %v2751_v49 = vadd.f32 %v243_v33, %v2701_v29  ;;  %v187_v53 = vpop.f32.mrf.mxu1 }
  0xc9   :  { %v2754_v52 = vadd.f32 %v158_v17, %v2685_v11  ;;  %v2757_v50 = vadd.f32 %v187_v53, %v2689_v14 }
  0xca   :  { %3072 = vst [vmem:[#allocation26_spill] sm:$0xff] %v2748_v30 }
  0xcb   :  { %3073 = vst [vmem:[#allocation27_spill] sm:$0xff] %v2751_v49 }
  0xcc   :  { %3074 = vst [vmem:[#allocation28_spill] sm:$0xff] %v2754_v52 }
  0xcd   :  { %3075 = vst [vmem:[#allocation29_spill] sm:$0xff] %v2757_v50 }
  0xcf   :  { %v216_v63 = vpop.f32.mrf.mxu2  ;;  %v245_v30 = vpop.f32.mrf.mxu3 }
  0xd0   :  { %v2762_v24 = vadd.f32 %v216_v63, %v2699_v27  ;;  %v449_v57 = vpop.f32.mrf.mxu0  ;;  %v2765_v33 = vadd.f32 %v245_v30, %v2701_v29  ;;  %v462_v17 = vpop.f32.mrf.mxu1 }
  0xd1   :  { %v492_v49 = vadd.f32 %v449_v57, %v142_v62  ;;  %v493_v52 = vadd.f32 %v462_v17, %v171_v10 }
  0xd2   :  { %3076 = vst [vmem:[#allocation30_spill] sm:$0xff] %v2762_v24 }
  0xd3   :  { %3077 = vst [vmem:[#allocation31_spill] sm:$0xff] %v2765_v33  ;;  %v496_v48 = vmul.f32 0.5, %v492_v49  ;;  %v500_v43 = vmul.f32 0.5, %v493_v52 }
  0xd5   :  { %2255 = vtanh.f32 %v496_v48 }
  0xd6   :  { %2257 = vtanh.f32 %v500_v43 }
  0xd7   :  { %v475_v53 = vpop.f32.mrf.mxu2  ;;  %v488_v24 = vpop.f32.mrf.mxu3 }
  0xd8   :  { %v494_v63 = vadd.f32 %v475_v53, %v200_v1  ;;  %v451_v50 = vpop.f32.mrf.mxu0  ;;  %v495_v42 = vadd.f32 %v488_v24, %v229_v2  ;;  %v464_v30 = vpop.f32.mrf.mxu1 }
  0xda   :  { %2259 = vtanh.f32 %v494_v63  ;;  %v505_v57 = vmul.f32 0.5, %v495_v42 }
  0xdb   :  { %v2256_v62 = vpop.eup %2255 }
  0xdc   :  { %v2258_v10 = vpop.eup %2257  ;;  %v498_v49 = vmul.f32 0.5, %v2256_v62  ;;  %2261 = vtanh.f32 %v505_v57 }
  0xdd   :  { %v502_v52 = vmul.f32 0.5, %v2258_v10 }
  0xde   :  { %v499_v48 = vadd.f32 0.5, %v498_v49  ;;  %v202_v49 = vadd.f32 %v2687_v13, %v2699_v27 }
  0xdf   :  { %v503_v17 = vadd.f32 0.5, %v502_v52  ;;  %v477_v3 = vpop.f32.mrf.mxu2  ;;  %v490_v33 = vpop.f32.mrf.mxu3  ;;  %v231_v52 = vadd.f32 %v2691_v15, %v2701_v29 }
  0xe0   :  { %v2260_v43 = vpop.eup %2259 }
  0xe1   :  { %v509_v36 = vmul.f32 0.0, %v503_v17  ;;  %v510_v4 = vmul.f32 %v2260_v43, %v499_v48 }
  0xe2   :  { %v2262_v41 = vpop.eup %2261 }
  0xe3   :  { %v2771_v1 = vadd.f32 %v510_v4, %v509_v36  ;;  %v507_v50 = vmul.f32 0.5, %v2262_v41  ;;  %v144_v36 = vadd.f32 %v2678_v5, %v2685_v11  ;;  %v173_v41 = vadd.f32 %v2680_v9, %v2689_v14 }
  0xe5   :  { %2263 = vtanh.f32 %v2771_v1  ;;  %v508_v24 = vadd.f32 0.5, %v507_v50 }
  0xeb   :  { %v2264_v2 = vpop.eup %2263 }
  0xec   :  { %v2774_v42 = vmul.f32 %v2264_v2, %v508_v24 }
  0xee   :  { %v517_v53 = vpack.c.bf16 %v2774_v42, %v2774_v42  ;;  %vm514_vm1 = vcmp.gt.f32.partialorder %v2774_v42, 0.0 }
  0xf0   :  { %526 = vmatmul.bf16.vlgmr.msra.gmra.mxu0 %v517_v53  ;;  %539 = vmatmul.bf16.vlgmr.msra.gmra.mxu1 %v517_v53 }
  0xf1   :  { %552 = vmatmul.bf16.vlgmr.msra.gmra.mxu2 %v517_v53  ;;  %565 = vmatmul.bf16.vlgmr.msra.gmra.mxu3 %v517_v53 }
  0xf2   :  { %674 = vmatpush.bf16.msra.mxu0 %v2489_v16  ;;  %687 = vmatpush.bf16.msra.mxu1 %v2491_v20 }
  0xf3   :  { %700 = vmatpush.bf16.msra.mxu2 %v2493_v21  ;;  %713 = vmatpush.bf16.msra.mxu3 %v2496_v25 }
  0xf6   :  { %675 = vmatpush.bf16.msra.mxu0 %v2502_v32  ;;  %688 = vmatpush.bf16.msra.mxu1 %v2506_v34 }
  0xf7   :  { %701 = vmatpush.bf16.msra.mxu2 %v2508_v35  ;;  %714 = vmatpush.bf16.msra.mxu3 %v2511_v39 }
  0xfa   :  { %676 = vmatpush.bf16.msra.mxu0 %v2514_v45  ;;  %689 = vmatpush.bf16.msra.mxu1 %v2518_v46 }
  0xfb   :  { %702 = vmatpush.bf16.msra.mxu2 %v2520_v47  ;;  %715 = vmatpush.bf16.msra.mxu3 %v2523_v51 }
  0xfe   :  { %677 = vmatpush.bf16.msra.mxu0 %v2529_v58  ;;  %690 = vmatpush.bf16.msra.mxu1 %v2533_v59 }
  0xff   :  { %703 = vmatpush.bf16.msra.mxu2 %v2535_v60  ;;  %716 = vmatpush.bf16.msra.mxu3 %v2538_v0 }
 0x102   :  { %678 = vmatpush.bf16.msra.mxu0 %v2541_v6  ;;  %691 = vmatpush.bf16.msra.mxu1 %v2545_v7 }
 0x103   :  { %704 = vmatpush.bf16.msra.mxu2 %v2547_v8  ;;  %717 = vmatpush.bf16.msra.mxu3 %v2551_v12 }
 0x106   :  { %679 = vmatpush.bf16.msra.mxu0 %v2557_v19  ;;  %692 = vmatpush.bf16.msra.mxu1 %v2561_v22 }
 0x107   :  { %705 = vmatpush.bf16.msra.mxu2 %v2563_v23  ;;  %718 = vmatpush.bf16.msra.mxu3 %v2566_v28 }
 0x10a   :  { %680 = vmatpush.bf16.msra.mxu0 %v2569_v37  ;;  %693 = vmatpush.bf16.msra.mxu1 %v2573_v38 }
 0x10b   :  { %706 = vmatpush.bf16.msra.mxu2 %v2575_v40  ;;  %719 = vmatpush.bf16.msra.mxu3 %v2578_v44 }
 0x10e   :  { %681 = vmatpush.bf16.msra.mxu0 %v2581_v54  ;;  %694 = vmatpush.bf16.msra.mxu1 %v2585_v55 }
 0x10f   :  { %707 = vmatpush.bf16.msra.mxu2 %v2587_v56  ;;  %720 = vmatpush.bf16.msra.mxu3 %v2593_v61 }
 0x16d   :  { %v527_v33 = vpop.f32.mrf.mxu0  ;;  %v540_v63 = vpop.f32.mrf.mxu1 }
 0x16e   :  { %v570_v30 = vadd.f32 %v527_v33, %v144_v36  ;;  %v571_v62 = vadd.f32 %v540_v63, %v173_v41 }
 0x170   :  { %v574_v57 = vmul.f32 0.5, %v570_v30  ;;  %v578_v10 = vmul.f32 0.5, %v571_v62 }
 0x172   :  { %2265 = vtanh.f32 %v574_v57 }
 0x173   :  { %2267 = vtanh.f32 %v578_v10 }
 0x174   :  { %v553_v48 = vpop.f32.mrf.mxu2  ;;  %v566_v17 = vpop.f32.mrf.mxu3 }
 0x175   :  { %v572_v5 = vadd.f32 %v553_v48, %v202_v49  ;;  %v573_v3 = vadd.f32 %v566_v17, %v231_v52  ;;  %v529_v43 = vpop.f32.mrf.mxu0  ;;  %v542_v9 = vpop.f32.mrf.mxu1 }
 0x177   :  { %2269 = vtanh.f32 %v572_v5  ;;  %v583_v4 = vmul.f32 0.5, %v573_v3 }
 0x178   :  { %v2266_v50 = vpop.eup %2265 }
 0x179   :  { %v2268_v24 = vpop.eup %2267  ;;  %v576_v2 = vmul.f32 0.5, %v2266_v50  ;;  %2271 = vtanh.f32 %v583_v4 }
 0x17a   :  { %v580_v53 = vmul.f32 0.5, %v2268_v24 }
 0x17b   :  { %v577_v36 = vadd.f32 0.5, %v576_v2 }
 0x17c   :  { %v581_v41 = vadd.f32 0.5, %v580_v53  ;;  %v555_v13 = vpop.f32.mrf.mxu2  ;;  %v568_v33 = vpop.f32.mrf.mxu3  ;;  %v3078_v53 = vld [vmem:[#allocation12_spill] sm:$0xff] }
 0x17d   :  { %v2270_v63 = vpop.eup %2269 }
 0x17e   :  { %v587_v15 = vmul.f32 %v581_v41, %v2771_v1  ;;  %v588_v30 = vmul.f32 %v2270_v63, %v577_v36 }
 0x17f   :  { %v2272_v62 = vpop.eup %2271 }
 0x180   :  { %v2819_v57 = vadd.f32 %v588_v30, %v587_v15  ;;  %v585_v10 = vmul.f32 0.5, %v2272_v62 }
 0x182   :  { %2273 = vtanh.f32 %v2819_v57  ;;  %v586_v49 = vadd.f32 0.5, %v585_v10 }
 0x188   :  { %v2274_v52 = vpop.eup %2273 }
 0x189   :  { %v2822_v48 = vmul.f32 %v2274_v52, %v586_v49 }
 0x18b   :  { %v595_v17 = vpack.c.bf16 %v2822_v48, %v2822_v48  ;;  %vm592_vm2 = vcmp.gt.f32.partialorder %v2822_v48, 0.0 }
 0x18d   :  { %604 = vmatmul.bf16.vlgmr.msrb.gmra.mxu0 %v595_v17  ;;  %617 = vmatmul.bf16.vlgmr.msrb.gmra.mxu1 %v595_v17 }
 0x18e   :  { %630 = vmatmul.bf16.vlgmr.msrb.gmra.mxu2 %v595_v17  ;;  %643 = vmatmul.bf16.vlgmr.msrb.gmra.mxu3 %v595_v17 }
 0x18f   :  { %752 = vmatpush.bf16.msrb.mxu0 %v2489_v16  ;;  %765 = vmatpush.bf16.msrb.mxu1 %v2491_v20 }
 0x190   :  { %778 = vmatpush.bf16.msrb.mxu2 %v2493_v21  ;;  %791 = vmatpush.bf16.msrb.mxu3 %v2496_v25 }
 0x193   :  { %753 = vmatpush.bf16.msrb.mxu0 %v2502_v32  ;;  %766 = vmatpush.bf16.msrb.mxu1 %v2506_v34 }
 0x194   :  { %779 = vmatpush.bf16.msrb.mxu2 %v2508_v35  ;;  %792 = vmatpush.bf16.msrb.mxu3 %v2511_v39 }
 0x197   :  { %754 = vmatpush.bf16.msrb.mxu0 %v2514_v45  ;;  %767 = vmatpush.bf16.msrb.mxu1 %v2518_v46 }
 0x198   :  { %780 = vmatpush.bf16.msrb.mxu2 %v2520_v47  ;;  %793 = vmatpush.bf16.msrb.mxu3 %v2523_v51 }
 0x19b   :  { %755 = vmatpush.bf16.msrb.mxu0 %v2529_v58  ;;  %768 = vmatpush.bf16.msrb.mxu1 %v2533_v59 }
 0x19c   :  { %781 = vmatpush.bf16.msrb.mxu2 %v2535_v60  ;;  %794 = vmatpush.bf16.msrb.mxu3 %v2538_v0 }
 0x19f   :  { %756 = vmatpush.bf16.msrb.mxu0 %v2541_v6  ;;  %769 = vmatpush.bf16.msrb.mxu1 %v2545_v7 }
 0x1a0   :  { %782 = vmatpush.bf16.msrb.mxu2 %v2547_v8  ;;  %795 = vmatpush.bf16.msrb.mxu3 %v2551_v12 }
 0x1a3   :  { %757 = vmatpush.bf16.msrb.mxu0 %v2557_v19  ;;  %770 = vmatpush.bf16.msrb.mxu1 %v2561_v22 }
 0x1a4   :  { %783 = vmatpush.bf16.msrb.mxu2 %v2563_v23  ;;  %796 = vmatpush.bf16.msrb.mxu3 %v2566_v28 }
 0x1a7   :  { %758 = vmatpush.bf16.msrb.mxu0 %v2569_v37  ;;  %771 = vmatpush.bf16.msrb.mxu1 %v2573_v38 }
 0x1a8   :  { %784 = vmatpush.bf16.msrb.mxu2 %v2575_v40  ;;  %797 = vmatpush.bf16.msrb.mxu3 %v2578_v44 }
 0x1ab   :  { %759 = vmatpush.bf16.msrb.mxu0 %v2581_v54  ;;  %772 = vmatpush.bf16.msrb.mxu1 %v2585_v55 }
 0x1ac   :  { %785 = vmatpush.bf16.msrb.mxu2 %v2587_v56  ;;  %798 = vmatpush.bf16.msrb.mxu3 %v2593_v61 }
 0x20a   :  { %v605_v1 = vpop.f32.mrf.mxu0  ;;  %v618_v5 = vpop.f32.mrf.mxu1 }
 0x20b   :  { %v648_v3 = vadd.f32 %v605_v1, %v2694_v18  ;;  %v649_v43 = vadd.f32 %v618_v5, %v2697_v26 }
 0x20d   :  { %v652_v9 = vmul.f32 0.5, %v648_v3  ;;  %v656_v4 = vmul.f32 0.5, %v649_v43 }
 0x20f   :  { %2275 = vtanh.f32 %v652_v9 }
 0x210   :  { %2277 = vtanh.f32 %v656_v4 }
 0x211   :  { %v631_v50 = vpop.f32.mrf.mxu2  ;;  %v644_v24 = vpop.f32.mrf.mxu3 }
 0x212   :  { %v650_v2 = vadd.f32 %v631_v50, %v2704_v31  ;;  %v651_v36 = vadd.f32 %v644_v24, %v3078_v53  ;;  %v607_v41 = vpop.f32.mrf.mxu0  ;;  %v620_v13 = vpop.f32.mrf.mxu1 }
 0x214   :  { %2279 = vtanh.f32 %v650_v2  ;;  %v661_v33 = vmul.f32 0.5, %v651_v36  ;;  %v3080_v2 = vld [vmem:[#allocation13_spill] sm:$0xff] }
 0x215   :  { %v2276_v63 = vpop.eup %2275  ;;  %v178_v53 = vadd.f32 %v3080_v2, %v2689_v14 }
 0x216   :  { %v2278_v15 = vpop.eup %2277  ;;  %v654_v30 = vmul.f32 0.5, %v2276_v63  ;;  %2281 = vtanh.f32 %v661_v33 }
 0x217   :  { %v658_v18 = vmul.f32 0.5, %v2278_v15 }
 0x218   :  { %v655_v26 = vadd.f32 0.5, %v654_v30  ;;  %v3081_v30 = vld [vmem:[#allocation14_spill] sm:$0xff] }
 0x219   :  { %v659_v62 = vadd.f32 0.5, %v658_v18  ;;  %v633_v10 = vpop.f32.mrf.mxu2  ;;  %v646_v49 = vpop.f32.mrf.mxu3  ;;  %v207_v18 = vadd.f32 %v3081_v30, %v2699_v27 }
 0x21a   :  { %v2280_v52 = vpop.eup %2279 }
 0x21b   :  { %v665_v17 = vmul.f32 %v659_v62, %v2819_v57  ;;  %v666_v1 = vmul.f32 %v2280_v52, %v655_v26  ;;  %v3079_v57 = vld [vmem:[#allocation11_spill] sm:$0xff] }
 0x21c   :  { %v2282_v31 = vpop.eup %2281  ;;  %v149_v24 = vadd.f32 %v3079_v57, %v2685_v11  ;;  %v3082_v26 = vld [vmem:[#allocation15_spill] sm:$0xff] }
 0x21d   :  { %v2863_v5 = vadd.f32 %v666_v1, %v665_v17  ;;  %v663_v3 = vmul.f32 0.5, %v2282_v31  ;;  %v236_v62 = vadd.f32 %v3082_v26, %v2701_v29  ;;  %v3083_v26 = vld [vmem:[#allocation16_spill] sm:$0xff] }
 0x21f   :  { %2283 = vtanh.f32 %v2863_v5  ;;  %v664_v43 = vadd.f32 0.5, %v663_v3 }
 0x225   :  { %v2284_v9 = vpop.eup %2283 }
 0x226   :  { %v2866_v4 = vmul.f32 %v2284_v9, %v664_v43 }
 0x228   :  { %v673_v50 = vpack.c.bf16 %v2866_v4, %v2866_v4  ;;  %vm670_vm3 = vcmp.gt.f32.partialorder %v2866_v4, 0.0 }
 0x22a   :  { %682 = vmatmul.bf16.vlgmr.msra.gmra.mxu0 %v673_v50  ;;  %695 = vmatmul.bf16.vlgmr.msra.gmra.mxu1 %v673_v50 }
 0x22b   :  { %708 = vmatmul.bf16.vlgmr.msra.gmra.mxu2 %v673_v50  ;;  %721 = vmatmul.bf16.vlgmr.msra.gmra.mxu3 %v673_v50 }
 0x22c   :  { %830 = vmatpush.bf16.msra.mxu0 %v2489_v16  ;;  %843 = vmatpush.bf16.msra.mxu1 %v2491_v20 }
 0x22d   :  { %856 = vmatpush.bf16.msra.mxu2 %v2493_v21  ;;  %869 = vmatpush.bf16.msra.mxu3 %v2496_v25 }
 0x230   :  { %831 = vmatpush.bf16.msra.mxu0 %v2502_v32  ;;  %844 = vmatpush.bf16.msra.mxu1 %v2506_v34 }
 0x231   :  { %857 = vmatpush.bf16.msra.mxu2 %v2508_v35  ;;  %870 = vmatpush.bf16.msra.mxu3 %v2511_v39 }
 0x234   :  { %832 = vmatpush.bf16.msra.mxu0 %v2514_v45  ;;  %845 = vmatpush.bf16.msra.mxu1 %v2518_v46 }
 0x235   :  { %858 = vmatpush.bf16.msra.mxu2 %v2520_v47  ;;  %871 = vmatpush.bf16.msra.mxu3 %v2523_v51 }
 0x238   :  { %833 = vmatpush.bf16.msra.mxu0 %v2529_v58  ;;  %846 = vmatpush.bf16.msra.mxu1 %v2533_v59 }
 0x239   :  { %859 = vmatpush.bf16.msra.mxu2 %v2535_v60  ;;  %872 = vmatpush.bf16.msra.mxu3 %v2538_v0 }
 0x23c   :  { %834 = vmatpush.bf16.msra.mxu0 %v2541_v6  ;;  %847 = vmatpush.bf16.msra.mxu1 %v2545_v7 }
 0x23d   :  { %860 = vmatpush.bf16.msra.mxu2 %v2547_v8  ;;  %873 = vmatpush.bf16.msra.mxu3 %v2551_v12 }
 0x240   :  { %835 = vmatpush.bf16.msra.mxu0 %v2557_v19  ;;  %848 = vmatpush.bf16.msra.mxu1 %v2561_v22 }
 0x241   :  { %861 = vmatpush.bf16.msra.mxu2 %v2563_v23  ;;  %874 = vmatpush.bf16.msra.mxu3 %v2566_v28 }
 0x244   :  { %836 = vmatpush.bf16.msra.mxu0 %v2569_v37  ;;  %849 = vmatpush.bf16.msra.mxu1 %v2573_v38 }
 0x245   :  { %862 = vmatpush.bf16.msra.mxu2 %v2575_v40  ;;  %875 = vmatpush.bf16.msra.mxu3 %v2578_v44 }
 0x248   :  { %837 = vmatpush.bf16.msra.mxu0 %v2581_v54  ;;  %850 = vmatpush.bf16.msra.mxu1 %v2585_v55 }
 0x249   :  { %863 = vmatpush.bf16.msra.mxu2 %v2587_v56  ;;  %876 = vmatpush.bf16.msra.mxu3 %v2593_v61 }
 0x2a7   :  { %v683_v36 = vpop.f32.mrf.mxu0  ;;  %v696_v41 = vpop.f32.mrf.mxu1 }
 0x2a8   :  { %v726_v13 = vadd.f32 %v683_v36, %v149_v24  ;;  %v727_v33 = vadd.f32 %v696_v41, %v178_v53 }
 0x2aa   :  { %v730_v63 = vmul.f32 0.5, %v726_v13  ;;  %v734_v15 = vmul.f32 0.5, %v727_v33 }
 0x2ac   :  { %2285 = vtanh.f32 %v730_v63 }
 0x2ad   :  { %2287 = vtanh.f32 %v734_v15 }
 0x2ae   :  { %v709_v10 = vpop.f32.mrf.mxu2  ;;  %v722_v49 = vpop.f32.mrf.mxu3 }
 0x2af   :  { %v728_v11 = vadd.f32 %v709_v10, %v207_v18  ;;  %v729_v52 = vadd.f32 %v722_v49, %v236_v62  ;;  %v685_v17 = vpop.f32.mrf.mxu0  ;;  %v698_v14 = vpop.f32.mrf.mxu1  ;;  %v3084_v10 = vld [vmem:[#allocation17_spill] sm:$0xff] }
 0x2b1   :  { %2289 = vtanh.f32 %v728_v11  ;;  %v739_v1 = vmul.f32 0.5, %v729_v52 }
 0x2b2   :  { %v2286_v31 = vpop.eup %2285 }
 0x2b3   :  { %v2288_v3 = vpop.eup %2287  ;;  %v732_v43 = vmul.f32 0.5, %v2286_v31  ;;  %2291 = vtanh.f32 %v739_v1  ;;  %v3085_v1 = vld [vmem:[#allocation18_spill] sm:$0xff] }
 0x2b4   :  { %v736_v9 = vmul.f32 0.5, %v2288_v3  ;;  %v3086_v3 = vld [vmem:[#allocation19_spill] sm:$0xff] }
 0x2b5   :  { %v733_v50 = vadd.f32 0.5, %v732_v43 }
 0x2b6   :  { %v737_v57 = vadd.f32 0.5, %v736_v9  ;;  %v711_v27 = vpop.f32.mrf.mxu2  ;;  %v724_v24 = vpop.f32.mrf.mxu3 }
 0x2b7   :  { %v2290_v2 = vpop.eup %2289 }
 0x2b8   :  { %v743_v29 = vmul.f32 %v737_v57, %v2863_v5  ;;  %v744_v53 = vmul.f32 %v2290_v2, %v733_v50 }
 0x2b9   :  { %v2292_v36 = vpop.eup %2291 }
 0x2ba   :  { %v2911_v41 = vadd.f32 %v744_v53, %v743_v29  ;;  %v741_v13 = vmul.f32 0.5, %v2292_v36 }
 0x2bc   :  { %2293 = vtanh.f32 %v2911_v41  ;;  %v742_v33 = vadd.f32 0.5, %v741_v13 }
 0x2c2   :  { %v2294_v63 = vpop.eup %2293 }
 0x2c3   :  { %v2914_v15 = vmul.f32 %v2294_v63, %v742_v33 }
 0x2c5   :  { %v751_v30 = vpack.c.bf16 %v2914_v15, %v2914_v15  ;;  %vm748_vm4 = vcmp.gt.f32.partialorder %v2914_v15, 0.0 }
 0x2c7   :  { %760 = vmatmul.bf16.vlgmr.msrb.gmra.mxu0 %v751_v30  ;;  %773 = vmatmul.bf16.vlgmr.msrb.gmra.mxu1 %v751_v30 }
 0x2c8   :  { %786 = vmatmul.bf16.vlgmr.msrb.gmra.mxu2 %v751_v30  ;;  %799 = vmatmul.bf16.vlgmr.msrb.gmra.mxu3 %v751_v30 }
 0x2c9   :  { %908 = vmatpush.bf16.msrb.mxu0 %v2489_v16  ;;  %921 = vmatpush.bf16.msrb.mxu1 %v2491_v20 }
 0x2ca   :  { %934 = vmatpush.bf16.msrb.mxu2 %v2493_v21  ;;  %947 = vmatpush.bf16.msrb.mxu3 %v2496_v25 }
 0x2cd   :  { %909 = vmatpush.bf16.msrb.mxu0 %v2502_v32  ;;  %922 = vmatpush.bf16.msrb.mxu1 %v2506_v34 }
 0x2ce   :  { %935 = vmatpush.bf16.msrb.mxu2 %v2508_v35  ;;  %948 = vmatpush.bf16.msrb.mxu3 %v2511_v39 }
 0x2d1   :  { %910 = vmatpush.bf16.msrb.mxu0 %v2514_v45  ;;  %923 = vmatpush.bf16.msrb.mxu1 %v2518_v46 }
 0x2d2   :  { %936 = vmatpush.bf16.msrb.mxu2 %v2520_v47  ;;  %949 = vmatpush.bf16.msrb.mxu3 %v2523_v51 }
 0x2d5   :  { %911 = vmatpush.bf16.msrb.mxu0 %v2529_v58  ;;  %924 = vmatpush.bf16.msrb.mxu1 %v2533_v59 }
 0x2d6   :  { %937 = vmatpush.bf16.msrb.mxu2 %v2535_v60  ;;  %950 = vmatpush.bf16.msrb.mxu3 %v2538_v0 }
 0x2d9   :  { %912 = vmatpush.bf16.msrb.mxu0 %v2541_v6  ;;  %925 = vmatpush.bf16.msrb.mxu1 %v2545_v7 }
 0x2da   :  { %938 = vmatpush.bf16.msrb.mxu2 %v2547_v8  ;;  %951 = vmatpush.bf16.msrb.mxu3 %v2551_v12 }
 0x2dd   :  { %913 = vmatpush.bf16.msrb.mxu0 %v2557_v19  ;;  %926 = vmatpush.bf16.msrb.mxu1 %v2561_v22 }
 0x2de   :  { %939 = vmatpush.bf16.msrb.mxu2 %v2563_v23  ;;  %952 = vmatpush.bf16.msrb.mxu3 %v2566_v28 }
 0x2e1   :  { %914 = vmatpush.bf16.msrb.mxu0 %v2569_v37  ;;  %927 = vmatpush.bf16.msrb.mxu1 %v2573_v38 }
 0x2e2   :  { %940 = vmatpush.bf16.msrb.mxu2 %v2575_v40  ;;  %953 = vmatpush.bf16.msrb.mxu3 %v2578_v44 }
 0x2e5   :  { %915 = vmatpush.bf16.msrb.mxu0 %v2581_v54  ;;  %928 = vmatpush.bf16.msrb.mxu1 %v2585_v55 }
 0x2e6   :  { %941 = vmatpush.bf16.msrb.mxu2 %v2587_v56  ;;  %954 = vmatpush.bf16.msrb.mxu3 %v2593_v61 }
 0x344   :  { %v761_v5 = vpop.f32.mrf.mxu0  ;;  %v774_v18 = vpop.f32.mrf.mxu1 }
 0x345   :  { %v804_v62 = vadd.f32 %v761_v5, %v3083_v26  ;;  %v805_v49 = vadd.f32 %v774_v18, %v3084_v10 }
 0x347   :  { %v808_v11 = vmul.f32 0.5, %v804_v62  ;;  %v812_v52 = vmul.f32 0.5, %v805_v49 }
 0x349   :  { %2295 = vtanh.f32 %v808_v11 }
 0x34a   :  { %2297 = vtanh.f32 %v812_v52 }
 0x34b   :  { %v787_v17 = vpop.f32.mrf.mxu2  ;;  %v800_v14 = vpop.f32.mrf.mxu3 }
 0x34c   :  { %v806_v31 = vadd.f32 %v787_v17, %v3085_v1  ;;  %v807_v43 = vadd.f32 %v800_v14, %v3086_v3  ;;  %v763_v9 = vpop.f32.mrf.mxu0  ;;  %v776_v50 = vpop.f32.mrf.mxu1  ;;  %v2189_v1 = vld [vmem:[#allocation5 + $0x38] sm:$0xff] }
 0x34d   :  { %v2205_v3 = vld [vmem:[#allocation5 + $0xb8] sm:$0xff]  ;;  %v2196_v9 = vld [vmem:[#allocation5 + $0x70] sm:$0xff] }
 0x34e   :  { %2299 = vtanh.f32 %v806_v31  ;;  %v817_v57 = vmul.f32 0.5, %v807_v43  ;;  %v2197_v31 = vld [vmem:[#allocation5 + $0x78] sm:$0xff]  ;;  %v2188_v43 = vld [vmem:[#allocation5 + $0x30] sm:$0xff] }
 0x34f   :  { %v2296_v27 = vpop.eup %2295  ;;  %v2204_v50 = vld [vmem:[#allocation5 + $0xb0] sm:$0xff] }
 0x350   :  { %v2298_v24 = vpop.eup %2297  ;;  %v810_v2 = vmul.f32 0.5, %v2296_v27  ;;  %2301 = vtanh.f32 %v817_v57  ;;  %v2187_v57 = vld [vmem:[#allocation5 + $0x28] sm:$0xff] }
 0x351   :  { %v814_v29 = vmul.f32 0.5, %v2298_v24  ;;  %v2195_v27 = vld [vmem:[#allocation5 + $0x68] sm:$0xff] }
 0x352   :  { %v811_v53 = vadd.f32 0.5, %v810_v2  ;;  %v2203_v24 = vld [vmem:[#allocation5 + $0xa8] sm:$0xff]  ;;  %v2186_v2 = vld [vmem:[#allocation5 + $0x20] sm:$0xff] }
 0x353   :  { %v815_v36 = vadd.f32 0.5, %v814_v29  ;;  %v789_v13 = vpop.f32.mrf.mxu2  ;;  %v802_v33 = vpop.f32.mrf.mxu3  ;;  %v2194_v29 = vld [vmem:[#allocation5 + $0x60] sm:$0xff] }
 0x354   :  { %v2300_v63 = vpop.eup %2299  ;;  %v2185_v13 = vld [vmem:[#allocation5 + $0x18] sm:$0xff] }
 0x355   :  { %v821_v30 = vmul.f32 %v815_v36, %v2911_v41  ;;  %v822_v5 = vmul.f32 %v2300_v63, %v811_v53  ;;  %v2202_v53 = vld [vmem:[#allocation5 + $0xa0] sm:$0xff]  ;;  %v2213_v36 = vld [vmem:[#allocation5 + $0xf8] sm:$0xff] }
 0x356   :  { %v2302_v18 = vpop.eup %2301  ;;  %v2193_v33 = vld [vmem:[#allocation5 + $0x58] sm:$0xff] }
 0x357   :  { %v2955_v26 = vadd.f32 %v822_v5, %v821_v30  ;;  %v819_v62 = vmul.f32 0.5, %v2302_v18  ;;  %v2201_v63 = vld [vmem:[#allocation5 + $0x98] sm:$0xff]  ;;  %v2212_v30 = vld [vmem:[#allocation5 + $0xf0] sm:$0xff] }
 0x358   :  { %v2184_v5 = vld [vmem:[#allocation5 + $0x10] sm:$0xff] }
 0x359   :  { %2303 = vtanh.f32 %v2955_v26  ;;  %v820_v10 = vadd.f32 0.5, %v819_v62  ;;  %v2192_v18 = vld [vmem:[#allocation5 + $0x50] sm:$0xff]  ;;  %v2211_v62 = vld [vmem:[#allocation5 + $0xe8] sm:$0xff] }
 0x35f   :  { %v2304_v49 = vpop.eup %2303 }
 0x360   :  { %v2958_v11 = vmul.f32 %v2304_v49, %v820_v10  ;;  %v2183_v10 = vld [vmem:[#allocation5 + $0x8] sm:$0xff] }
 0x361   :  { %v2191_v49 = vld [vmem:[#allocation5 + $0x48] sm:$0xff] }
 0x362   :  { %v829_v52 = vpack.c.bf16 %v2958_v11, %v2958_v11  ;;  %vm826_vm5 = vcmp.gt.f32.partialorder %v2958_v11, 0.0 }
 0x364   :  { %838 = vmatmul.bf16.vlgmr.msra.gmra.mxu0 %v829_v52  ;;  %851 = vmatmul.bf16.vlgmr.msra.gmra.mxu1 %v829_v52 }
 0x365   :  { %864 = vmatmul.bf16.vlgmr.msra.gmra.mxu2 %v829_v52  ;;  %877 = vmatmul.bf16.vlgmr.msra.gmra.mxu3 %v829_v52  ;;  %v2199_v52 = vld [vmem:[#allocation5 + $0x88] sm:$0xff] }
 0x366   :  { %986 = vmatpush.bf16.msra.mxu0 %v2489_v16  ;;  %999 = vmatpush.bf16.msra.mxu1 %v2491_v20 }
 0x367   :  { %1012 = vmatpush.bf16.msra.mxu2 %v2493_v21  ;;  %1025 = vmatpush.bf16.msra.mxu3 %v2496_v25  ;;  %v3087_v21 = vld [vmem:[#allocation20_spill] sm:$0xff] }
 0x36a   :  { %987 = vmatpush.bf16.msra.mxu0 %v2502_v32  ;;  %1000 = vmatpush.bf16.msra.mxu1 %v2506_v34  ;;  %v3088_v32 = vld [vmem:[#allocation21_spill] sm:$0xff] }
 0x36b   :  { %1013 = vmatpush.bf16.msra.mxu2 %v2508_v35  ;;  %1026 = vmatpush.bf16.msra.mxu3 %v2511_v39 }
 0x36e   :  { %988 = vmatpush.bf16.msra.mxu0 %v2514_v45  ;;  %1001 = vmatpush.bf16.msra.mxu1 %v2518_v46 }
 0x36f   :  { %1014 = vmatpush.bf16.msra.mxu2 %v2520_v47  ;;  %1027 = vmatpush.bf16.msra.mxu3 %v2523_v51  ;;  %v3089_v47 = vld [vmem:[#allocation22_spill] sm:$0xff] }
 0x372   :  { %989 = vmatpush.bf16.msra.mxu0 %v2529_v58  ;;  %1002 = vmatpush.bf16.msra.mxu1 %v2533_v59  ;;  %v3090_v58 = vld [vmem:[#allocation23_spill] sm:$0xff] }
 0x373   :  { %1015 = vmatpush.bf16.msra.mxu2 %v2535_v60  ;;  %1028 = vmatpush.bf16.msra.mxu3 %v2538_v0 }
 0x376   :  { %990 = vmatpush.bf16.msra.mxu0 %v2541_v6  ;;  %1003 = vmatpush.bf16.msra.mxu1 %v2545_v7 }
 0x377   :  { %1016 = vmatpush.bf16.msra.mxu2 %v2547_v8  ;;  %1029 = vmatpush.bf16.msra.mxu3 %v2551_v12 }
 0x37a   :  { %991 = vmatpush.bf16.msra.mxu0 %v2557_v19  ;;  %1004 = vmatpush.bf16.msra.mxu1 %v2561_v22 }
 0x37b   :  { %1017 = vmatpush.bf16.msra.mxu2 %v2563_v23  ;;  %1030 = vmatpush.bf16.msra.mxu3 %v2566_v28 }
 0x37e   :  { %992 = vmatpush.bf16.msra.mxu0 %v2569_v37  ;;  %1005 = vmatpush.bf16.msra.mxu1 %v2573_v38 }
 0x37f   :  { %1018 = vmatpush.bf16.msra.mxu2 %v2575_v40  ;;  %1031 = vmatpush.bf16.msra.mxu3 %v2578_v44 }
 0x382   :  { %993 = vmatpush.bf16.msra.mxu0 %v2581_v54  ;;  %1006 = vmatpush.bf16.msra.mxu1 %v2585_v55 }
 0x383   :  { %1019 = vmatpush.bf16.msra.mxu2 %v2587_v56  ;;  %1032 = vmatpush.bf16.msra.mxu3 %v2593_v61 }
 0x3e1   :  { %v839_v16 = vpop.f32.mrf.mxu0  ;;  %v852_v20 = vpop.f32.mrf.mxu1 }
 0x3e2   :  { %v882_v25 = vadd.f32 %v839_v16, %v3087_v21  ;;  %v883_v34 = vadd.f32 %v852_v20, %v3088_v32  ;;  %v2210_v16 = vld [vmem:[#allocation5 + $0xe0] sm:$0xff] }
 0x3e3   :  { %v2182_v20 = vld [vmem:[#allocation5] sm:$0xff] }
 0x3e4   :  { %v886_v35 = vmul.f32 0.5, %v882_v25  ;;  %v890_v39 = vmul.f32 0.5, %v883_v34  ;;  %v2190_v21 = vld [vmem:[#allocation5 + $0x40] sm:$0xff] }
 0x3e5   :  { %v2198_v25 = vld [vmem:[#allocation5 + $0x80] sm:$0xff] }
 0x3e6   :  { %2305 = vtanh.f32 %v886_v35  ;;  %v2209_v35 = vld [vmem:[#allocation5 + $0xd8] sm:$0xff] }
 0x3e7   :  { %2307 = vtanh.f32 %v890_v39  ;;  %v3091_v39 = vld [vmem:[#allocation24_spill] sm:$0xff] }
 0x3e8   :  { %v865_v45 = vpop.f32.mrf.mxu2  ;;  %v878_v46 = vpop.f32.mrf.mxu3 }
 0x3e9   :  { %v884_v51 = vadd.f32 %v865_v45, %v3089_v47  ;;  %v885_v59 = vadd.f32 %v878_v46, %v3090_v58  ;;  %v841_v60 = vpop.f32.mrf.mxu0  ;;  %v854_v0 = vpop.f32.mrf.mxu1  ;;  %v3092_v46 = vld [vmem:[#allocation25_spill] sm:$0xff] }
 0x3eb   :  { %2309 = vtanh.f32 %v884_v51  ;;  %v895_v6 = vmul.f32 0.5, %v885_v59  ;;  %v2208_v59 = vld [vmem:[#allocation5 + $0xd0] sm:$0xff] }
 0x3ec   :  { %v2306_v7 = vpop.eup %2305 }
 0x3ed   :  { %v2308_v8 = vpop.eup %2307  ;;  %v888_v12 = vmul.f32 0.5, %v2306_v7  ;;  %2311 = vtanh.f32 %v895_v6  ;;  %v2207_v6 = vld [vmem:[#allocation5 + $0xc8] sm:$0xff]  ;;  %v3093_v7 = vld [vmem:[#allocation26_spill] sm:$0xff] }
 0x3ee   :  { %v892_v19 = vmul.f32 0.5, %v2308_v8 }
 0x3ef   :  { %v889_v22 = vadd.f32 0.5, %v888_v12  ;;  %v3094_v12 = vld [vmem:[#allocation27_spill] sm:$0xff] }
 0x3f0   :  { %v893_v23 = vadd.f32 0.5, %v892_v19  ;;  %v867_v28 = vpop.f32.mrf.mxu2  ;;  %v880_v37 = vpop.f32.mrf.mxu3 }
 0x3f1   :  { %v2310_v38 = vpop.eup %2309 }
 0x3f2   :  { %v899_v40 = vmul.f32 %v893_v23, %v2955_v26  ;;  %v900_v44 = vmul.f32 %v2310_v38, %v889_v22  ;;  %v2200_v26 = vld [vmem:[#allocation5 + $0x90] sm:$0xff]  ;;  %v2206_v38 = vld [vmem:[#allocation5 + $0xc0] sm:$0xff] }
 0x3f3   :  { %v2312_v54 = vpop.eup %2311 }
 0x3f4   :  { %v2999_v55 = vadd.f32 %v900_v44, %v899_v40  ;;  %v897_v56 = vmul.f32 0.5, %v2312_v54 }
 0x3f6   :  { %2313 = vtanh.f32 %v2999_v55  ;;  %v898_v61 = vadd.f32 0.5, %v897_v56 }
 0x3fc   :  { %v2314_v41 = vpop.eup %2313 }
 0x3fd   :  { %v3002_v17 = vmul.f32 %v2314_v41, %v898_v61 }
 0x3ff   :  { %v907_v14 = vpack.c.bf16 %v3002_v17, %v3002_v17  ;;  %vm904_vm6 = vcmp.gt.f32.partialorder %v3002_v17, 0.0 }
 0x401   :  { %916 = vmatmul.bf16.vlgmr.msrb.gmra.mxu0 %v907_v14  ;;  %929 = vmatmul.bf16.vlgmr.msrb.gmra.mxu1 %v907_v14 }
 0x402   :  { %942 = vmatmul.bf16.vlgmr.msrb.gmra.mxu2 %v907_v14  ;;  %955 = vmatmul.bf16.vlgmr.msrb.gmra.mxu3 %v907_v14 }
 0x403   :  { %1587 = vmatpush.bf16.msrb.mxu0 %v2189_v1  ;;  %1600 = vmatpush.bf16.msrb.mxu1 %v2197_v31 }
 0x404   :  { %1613 = vmatpush.bf16.msrb.mxu2 %v2205_v3  ;;  %1626 = vmatpush.bf16.msrb.mxu3 %v2213_v36  ;;  %v2237_v36 = vld [vmem:[#allocation5 + $0x1b8] sm:$0xff] }
 0x407   :  { %1588 = vmatpush.bf16.msrb.mxu0 %v2188_v43  ;;  %1601 = vmatpush.bf16.msrb.mxu1 %v2196_v9 }
 0x408   :  { %1614 = vmatpush.bf16.msrb.mxu2 %v2204_v50  ;;  %1627 = vmatpush.bf16.msrb.mxu3 %v2212_v30  ;;  %v2227_v30 = vld [vmem:[#allocation5 + $0x168] sm:$0xff] }
 0x40b   :  { %1589 = vmatpush.bf16.msrb.mxu0 %v2187_v57  ;;  %1602 = vmatpush.bf16.msrb.mxu1 %v2195_v27 }
 0x40c   :  { %1615 = vmatpush.bf16.msrb.mxu2 %v2203_v24  ;;  %1628 = vmatpush.bf16.msrb.mxu3 %v2211_v62  ;;  %v671_v62 = vmul.f32 0.01, %v2866_v4 }
 0x40f   :  { %1590 = vmatpush.bf16.msrb.mxu0 %v2186_v2  ;;  %1603 = vmatpush.bf16.msrb.mxu1 %v2194_v29  ;;  %v2221_v29 = vld [vmem:[#allocation5 + $0x138] sm:$0xff] }
 0x410   :  { %1616 = vmatpush.bf16.msrb.mxu2 %v2202_v53  ;;  %1629 = vmatpush.bf16.msrb.mxu3 %v2210_v16  ;;  %v2229_v53 = vld [vmem:[#allocation5 + $0x178] sm:$0xff]  ;;  %v2234_v16 = vld [vmem:[#allocation5 + $0x1a0] sm:$0xff] }
 0x413   :  { %1591 = vmatpush.bf16.msrb.mxu0 %v2185_v13  ;;  %1604 = vmatpush.bf16.msrb.mxu1 %v2193_v33  ;;  %v2228_v13 = vld [vmem:[#allocation5 + $0x170] sm:$0xff] }
 0x414   :  { %1617 = vmatpush.bf16.msrb.mxu2 %v2201_v63  ;;  %1630 = vmatpush.bf16.msrb.mxu3 %v2209_v35  ;;  %v2236_v33 = vld [vmem:[#allocation5 + $0x1b0] sm:$0xff]  ;;  %v2219_v63 = vld [vmem:[#allocation5 + $0x128] sm:$0xff] }
 0x417   :  { %1592 = vmatpush.bf16.msrb.mxu0 %v2184_v5  ;;  %1605 = vmatpush.bf16.msrb.mxu1 %v2192_v18  ;;  %v515_v5 = vmul.f32 0.01, %v2774_v42  ;;  %v593_v18 = vmul.f32 0.01, %v2822_v48 }
 0x418   :  { %1618 = vmatpush.bf16.msrb.mxu2 %v2200_v26  ;;  %1631 = vmatpush.bf16.msrb.mxu3 %v2208_v59  ;;  %v2235_v26 = vld [vmem:[#allocation5 + $0x1a8] sm:$0xff] }
 0x419   :  { %v2231_v59 = vld [vmem:[#allocation5 + $0x188] sm:$0xff] }
 0x41b   :  { %1593 = vmatpush.bf16.msrb.mxu0 %v2183_v10  ;;  %1606 = vmatpush.bf16.msrb.mxu1 %v2191_v49  ;;  %v749_v10 = vmul.f32 0.01, %v2914_v15  ;;  %v2218_v49 = vld [vmem:[#allocation5 + $0x120] sm:$0xff] }
 0x41c   :  { %1619 = vmatpush.bf16.msrb.mxu2 %v2199_v52  ;;  %1632 = vmatpush.bf16.msrb.mxu3 %v2207_v6  ;;  %v2226_v52 = vld [vmem:[#allocation5 + $0x160] sm:$0xff] }
 0x41f   :  { %1594 = vmatpush.bf16.msrb.mxu0 %v2182_v20  ;;  %1607 = vmatpush.bf16.msrb.mxu1 %v2190_v21  ;;  %v516_v20 = vsel %vm514_vm1, %v2774_v42, %v515_v5  ;;  %v594_v21 = vsel %vm592_vm2, %v2822_v48, %v593_v18  ;;  %v2216_v42 = vld [vmem:[#allocation5 + $0x110] sm:$0xff] }
 0x420   :  { %1620 = vmatpush.bf16.msrb.mxu2 %v2198_v25  ;;  %1633 = vmatpush.bf16.msrb.mxu3 %v2206_v38  ;;  %v672_v25 = vsel %vm670_vm3, %v2866_v4, %v671_v62  ;;  %v1064_v35 = vpack.c.bf16 %v594_v21, %v594_v21  ;;  %v2224_v48 = vld [vmem:[#allocation5 + $0x150] sm:$0xff]  ;;  %v2254_v62 = vld [vmem:[%s3055_s5] ss:$0 sm:$0xff]  ;;  %s2420_s5 = smov [#allocation7]  }
 0x421   :  { %v2232_v4 = vld [vmem:[#allocation5 + $0x190] sm:$0xff]  ;;  %s1697_s10 = sshll.u32 %s2420_s5, 4  ;;  %s1698_s10 = int_to_ptr.vmem [resolvable:$true] %s1697_s10 }
 0x47e   :  { %v917_v32 = vpop.f32.mrf.mxu0  ;;  %v930_v34 = vpop.f32.mrf.mxu1 }
 0x47f   :  { %v960_v45 = vadd.f32 %v917_v32, %v3091_v39  ;;  %v961_v47 = vadd.f32 %v930_v34, %v3092_v46  ;;  %v750_v32 = vsel %vm748_vm4, %v2914_v15, %v749_v10  ;;  %v1063_v34 = vpack.c.bf16 %v516_v20, %v516_v20  ;;  %v2217_v39 = vld [vmem:[#allocation5 + $0x118] sm:$0xff]  ;;  %v2215_v15 = vld [vmem:[#allocation5 + $0x108] sm:$0xff] }
 0x480   :  { %v1065_v46 = vpack.c.bf16 %v672_v25, %v672_v25 }
 0x481   :  { %v964_v51 = vmul.f32 0.5, %v960_v45  ;;  %v968_v58 = vmul.f32 0.5, %v961_v47  ;;  %v2225_v45 = vld [vmem:[#allocation5 + $0x158] sm:$0xff]  ;;  %v1066_v47 = vpack.c.bf16 %v750_v32, %v750_v32 }
 0x483   :  { %2315 = vtanh.f32 %v964_v51  ;;  %v2233_v51 = vld [vmem:[#allocation5 + $0x198] sm:$0xff] }
 0x484   :  { %2317 = vtanh.f32 %v968_v58  ;;  %v2223_v58 = vld [vmem:[#allocation5 + $0x148] sm:$0xff] }
 0x485   :  { %v943_v60 = vpop.f32.mrf.mxu2  ;;  %v956_v0 = vpop.f32.mrf.mxu3 }
 0x486   :  { %v962_v8 = vadd.f32 %v943_v60, %v3093_v7  ;;  %v963_v19 = vadd.f32 %v956_v0, %v3094_v12  ;;  %v919_v22 = vpop.f32.mrf.mxu0  ;;  %v932_v23 = vpop.f32.mrf.mxu1  ;;  %v827_v60 = vmul.f32 0.01, %v2958_v11  ;;  %v905_v0 = vmul.f32 0.01, %v3002_v17  ;;  %v2214_v7 = vld [vmem:[#allocation5 + $0x100] sm:$0xff] }
 0x487   :  { %v2230_v12 = vld [vmem:[#allocation5 + $0x180] sm:$0xff] }
 0x488   :  { %2319 = vtanh.f32 %v962_v8  ;;  %v973_v28 = vmul.f32 0.5, %v963_v19  ;;  %v2222_v8 = vld [vmem:[#allocation5 + $0x140] sm:$0xff]  ;;  %v828_v19 = vsel %vm826_vm5, %v2958_v11, %v827_v60  ;;  %v906_v22 = vsel %vm904_vm6, %v3002_v17, %v905_v0  ;;  %v2241_v17 = vld [vmem:[#allocation5 + $0x1d8] sm:$0xff] }
 0x489   :  { %v2316_v37 = vpop.eup %2315  ;;  %v2242_v11 = vld [vmem:[#allocation5 + $0x1e0] sm:$0xff] }
 0x48a   :  { %v2318_v40 = vpop.eup %2317  ;;  %v966_v44 = vmul.f32 0.5, %v2316_v37  ;;  %2321 = vtanh.f32 %v973_v28  ;;  %v1067_v28 = vpack.c.bf16 %v828_v19, %v828_v19  ;;  %v1068_v37 = vpack.c.bf16 %v906_v22, %v906_v22 }
 0x48b   :  { %v970_v54 = vmul.f32 0.5, %v2318_v40  ;;  %v2245_v40 = vld [vmem:[#allocation5 + $0x1f8] sm:$0xff] }
 0x48c   :  { %v967_v56 = vadd.f32 0.5, %v966_v44  ;;  %v2244_v44 = vld [vmem:[#allocation5 + $0x1f0] sm:$0xff] }
 0x48d   :  { %v971_v61 = vadd.f32 0.5, %v970_v54  ;;  %v945_v41 = vpop.f32.mrf.mxu2  ;;  %v958_v14 = vpop.f32.mrf.mxu3  ;;  %v2243_v54 = vld [vmem:[#allocation5 + $0x1e8] sm:$0xff] }
 0x48e   :  { %v2320_v1 = vpop.eup %2319  ;;  %v2238_v41 = vld [vmem:[#allocation5 + $0x1c0] sm:$0xff] }
 0x48f   :  { %v977_v31 = vmul.f32 %v971_v61, %v2999_v55  ;;  %v978_v3 = vmul.f32 %v2320_v1, %v967_v56  ;;  %v2220_v55 = vld [vmem:[#allocation5 + $0x130] sm:$0xff]  ;;  %v2239_v61 = vld [vmem:[#allocation5 + $0x1c8] sm:$0xff] }
 0x490   :  { %v2322_v43 = vpop.eup %2321  ;;  %v2240_v56 = vld [vmem:[#allocation5 + $0x1d0] sm:$0xff] }
 0x491   :  { %v3011_v9 = vadd.f32 %v978_v3, %v977_v31  ;;  %v975_v50 = vmul.f32 0.5, %v2322_v43  ;;  %v3095_v31 = vld [vmem:[#allocation28_spill] sm:$0xff]  ;;  %v3096_v43 = vld [vmem:[#allocation29_spill] sm:$0xff] }
 0x493   :  { %2323 = vtanh.f32 %v3011_v9  ;;  %v976_v57 = vadd.f32 0.5, %v975_v50 }
 0x499   :  { %v2324_v27 = vpop.eup %2323 }
 0x49a   :  { %v3014_v24 = vmul.f32 %v2324_v27, %v976_v57 }
 0x49c   :  { %v985_v2 = vpack.c.bf16 %v3014_v24, %v3014_v24  ;;  %v983_v6 = vmul.f32 0.01, %v3014_v24  ;;  %vm982_vm7 = vcmp.gt.f32.partialorder %v3014_v24, 0.0 }
 0x49e   :  { %994 = vmatmul.bf16.vlgmr.msra.gmra.mxu0 %v985_v2  ;;  %1007 = vmatmul.bf16.vlgmr.msra.gmra.mxu1 %v985_v2  ;;  %v984_v23 = vsel %vm982_vm7, %v3014_v24, %v983_v6 }
 0x49f   :  { %1020 = vmatmul.bf16.vlgmr.msra.gmra.mxu2 %v985_v2  ;;  %1033 = vmatmul.bf16.vlgmr.msra.gmra.mxu3 %v985_v2  ;;  %v1069_v38 = vpack.c.bf16 %v984_v23, %v984_v23 }
 0x4a0   :  { %1639 = vmatpush.bf16.msra.mxu0 %v2221_v29  ;;  %1652 = vmatpush.bf16.msra.mxu1 %v2229_v53  ;;  %v3097_v29 = vld [vmem:[#allocation30_spill] sm:$0xff] }
 0x4a1   :  { %1665 = vmatpush.bf16.msra.mxu2 %v2237_v36  ;;  %1678 = vmatpush.bf16.msra.mxu3 %v2245_v40  ;;  %v3098_v36 = vld [vmem:[#allocation31_spill] sm:$0xff] }
 0x4a4   :  { %1640 = vmatpush.bf16.msra.mxu0 %v2220_v55  ;;  %1653 = vmatpush.bf16.msra.mxu1 %v2228_v13 }
 0x4a5   :  { %1666 = vmatpush.bf16.msra.mxu2 %v2236_v33  ;;  %1679 = vmatpush.bf16.msra.mxu3 %v2244_v44 }
 0x4a8   :  { %1641 = vmatpush.bf16.msra.mxu0 %v2219_v63  ;;  %1654 = vmatpush.bf16.msra.mxu1 %v2227_v30 }
 0x4a9   :  { %1667 = vmatpush.bf16.msra.mxu2 %v2235_v26  ;;  %1680 = vmatpush.bf16.msra.mxu3 %v2243_v54 }
 0x4ac   :  { %1642 = vmatpush.bf16.msra.mxu0 %v2218_v49  ;;  %1655 = vmatpush.bf16.msra.mxu1 %v2226_v52 }
 0x4ad   :  { %1668 = vmatpush.bf16.msra.mxu2 %v2234_v16  ;;  %1681 = vmatpush.bf16.msra.mxu3 %v2242_v11 }
 0x4ae   :  { %1595 = vmatmul.bf16.vlgmr.msrb.gmra.mxu0 %v1063_v34  ;;  %1608 = vmatmul.bf16.vlgmr.msrb.gmra.mxu1 %v1064_v35 }
 0x4af   :  { %1621 = vmatmul.bf16.vlgmr.msrb.gmra.mxu2 %v1065_v46  ;;  %1634 = vmatmul.bf16.vlgmr.msrb.gmra.mxu3 %v1066_v47 }
 0x4b0   :  { %1643 = vmatpush.bf16.msra.mxu0 %v2217_v39  ;;  %1656 = vmatpush.bf16.msra.mxu1 %v2225_v45 }
 0x4b1   :  { %1669 = vmatpush.bf16.msra.mxu2 %v2233_v51  ;;  %1682 = vmatpush.bf16.msra.mxu3 %v2241_v17 }
 0x4b4   :  { %1644 = vmatpush.bf16.msra.mxu0 %v2216_v42  ;;  %1657 = vmatpush.bf16.msra.mxu1 %v2224_v48 }
 0x4b5   :  { %1670 = vmatpush.bf16.msra.mxu2 %v2232_v4  ;;  %1683 = vmatpush.bf16.msra.mxu3 %v2240_v56 }
 0x4b8   :  { %1645 = vmatpush.bf16.msra.mxu0 %v2215_v15  ;;  %1658 = vmatpush.bf16.msra.mxu1 %v2223_v58 }
 0x4b9   :  { %1671 = vmatpush.bf16.msra.mxu2 %v2231_v59  ;;  %1684 = vmatpush.bf16.msra.mxu3 %v2239_v61 }
 0x4bc   :  { %1646 = vmatpush.bf16.msra.mxu0 %v2214_v7  ;;  %1659 = vmatpush.bf16.msra.mxu1 %v2222_v8 }
 0x4bd   :  { %1672 = vmatpush.bf16.msra.mxu2 %v2230_v12  ;;  %1685 = vmatpush.bf16.msra.mxu3 %v2238_v41 }
 0x4bf   :  { %1647 = vmatmul.bf16.vlgmr.msra.gmra.mxu0 %v1067_v28  ;;  %1660 = vmatmul.bf16.vlgmr.msra.gmra.mxu1 %v1068_v37 }
 0x4c0   :  { %1673 = vmatmul.bf16.vlgmr.msra.gmra.mxu2 %v1069_v38 }
 0x51b   :  { %v995_v14 = vpop.f32.mrf.mxu0  ;;  %v1008_v1 = vpop.f32.mrf.mxu1 }
 0x51c   :  { %v1038_v3 = vadd.f32 %v995_v14, %v3095_v31  ;;  %v1039_v50 = vadd.f32 %v1008_v1, %v3096_v43 }
 0x51e   :  { %v1042_v57 = vmul.f32 0.5, %v1038_v3  ;;  %v1046_v27 = vmul.f32 0.5, %v1039_v50 }
 0x520   :  { %2325 = vtanh.f32 %v1042_v57 }
 0x521   :  { %2327 = vtanh.f32 %v1046_v27 }
 0x522   :  { %v1021_v24 = vpop.f32.mrf.mxu2  ;;  %v1034_v2 = vpop.f32.mrf.mxu3 }
 0x523   :  { %v1040_v53 = vadd.f32 %v1021_v24, %v3097_v29  ;;  %v1041_v55 = vadd.f32 %v1034_v2, %v3098_v36  ;;  %v997_v13 = vpop.f32.mrf.mxu0  ;;  %v1010_v33 = vpop.f32.mrf.mxu1 }
 0x525   :  { %2329 = vtanh.f32 %v1040_v53  ;;  %v1051_v63 = vmul.f32 0.5, %v1041_v55 }
 0x526   :  { %v2326_v30 = vpop.eup %2325 }
 0x527   :  { %v2328_v5 = vpop.eup %2327  ;;  %v1044_v18 = vmul.f32 0.5, %v2326_v30  ;;  %2331 = vtanh.f32 %v1051_v63 }
 0x528   :  { %v1048_v26 = vmul.f32 0.5, %v2328_v5 }
 0x529   :  { %v1045_v10 = vadd.f32 0.5, %v1044_v18 }
 0x52a   :  { %v1049_v49 = vadd.f32 0.5, %v1048_v26  ;;  %v1023_v52 = vpop.f32.mrf.mxu2  ;;  %v1036_v16 = vpop.f32.mrf.mxu3 }
 0x52b   :  { %v2330_v20 = vpop.eup %2329  ;;  %v1596_v21 = vpop.f32.mrf.mxu0 }
 0x52c   :  { %v1609_v25 = vpop.f32.mrf.mxu1  ;;  %v1055_v32 = vmul.f32 %v1049_v49, %v3011_v9  ;;  %v1056_v34 = vmul.f32 %v2330_v20, %v1045_v10  ;;  %v1597_v35 = vadd.f32 %v2254_v62, %v1596_v21 }
 0x52d   :  { %v2332_v39 = vpop.eup %2331 }
 0x52e   :  { %v1057_v45 = vadd.f32 %v1056_v34, %v1055_v32  ;;  %v1610_v46 = vadd.f32 %v1609_v25, %v1597_v35  ;;  %v1053_v47 = vmul.f32 0.5, %v2332_v39 }
 0x530   :  { %2333 = vtanh.f32 %v1057_v45  ;;  %v1054_v58 = vadd.f32 0.5, %v1053_v47 }
 0x532   :  { %v1622_v51 = vpop.f32.mrf.mxu2  ;;  %v1635_v42 = vpop.f32.mrf.mxu3 }
 0x533   :  { %v1623_v48 = vadd.f32 %v1622_v51, %v1610_v46  ;;  %v1598_v4 = vpop.f32.mrf.mxu0 }
 0x534   :  { %v1611_v15 = vpop.f32.mrf.mxu1 }
 0x535   :  { %v1636_v59 = vadd.f32 %v1635_v42, %v1623_v48 }
 0x536   :  { %v2334_v60 = vpop.eup %2333 }
 0x537   :  { %v1059_v0 = vmul.f32 %v2334_v60, %v1054_v58 }
 0x539   :  { %vm1060_vm8 = vcmp.gt.f32.partialorder %v1059_v0, 0.0  ;;  %v1061_v6 = vmul.f32 0.01, %v1059_v0 }
 0x53a   :  { %v1624_v7 = vpop.f32.mrf.mxu2  ;;  %v1637_v9 = vpop.f32.mrf.mxu3 }
 0x53b   :  { %v1062_v8 = vsel %vm1060_vm8, %v1059_v0, %v1061_v6 }
 0x53c   :  { %v1070_v12 = vpack.c.bf16 %v1062_v8, %v1062_v8  ;;  %v1648_v19 = vpop.f32.mrf.mxu0  ;;  %v1661_v22 = vpop.f32.mrf.mxu1 }
 0x53d   :  { %v1649_v23 = vadd.f32 %v1648_v19, %v1636_v59 }
 0x53e   :  { %1686 = vmatmul.bf16.vlgmr.msra.gmra.mxu3 %v1070_v12 }
 0x53f   :  { %v1662_v28 = vadd.f32 %v1661_v22, %v1649_v23 }
 0x543   :  { %v1674_v37 = vpop.f32.mrf.mxu2 }
 0x544   :  { %v1675_v38 = vadd.f32 %v1674_v37, %v1662_v28  ;;  %v1650_v40 = vpop.f32.mrf.mxu0  ;;  %v1663_v44 = vpop.f32.mrf.mxu1 }
 0x54b   :  { %v1676_v54 = vpop.f32.mrf.mxu2 }
 0x5c1   :  { %v1687_v11 = vpop.f32.mrf.mxu3 }
 0x5c2   :  { %v1688_v17 = vadd.f32 %v1687_v11, %v1675_v38 }
 0x5c4   :  { %1691 = vst [vmem:[#allocation7] sm:$0xff] %v1688_v17 }
 0x5c5   :  { %1702 = dma.vmem_to_hbm [thread:$0]  %s1698_s10, 128, %s1700_s12, [#allocation4]  }
 0x5c9   :  { %v1689_v56 = vpop.f32.mrf.mxu3 }
 0x5ca   :  { %2411 = dma.done.wait [#allocation4], 128  }
 0x5cb   :  { %2412 = vsyncadd [#allocation4], 4294967168 }
 0x5cc   :  { %1707 = vsyncpa [#allocation3], 1 }
 0x5cd   :  { %1708 = vsyncpa [#allocation6], 1 }
 0x5ce   :  { %1709 = vsyncpa [#allocation4], 1 }

</bundles_post_ra>
